<compile_context>
chip_gen: v6e
topology: v6e:2x2x1
jax: 0.10.0
libtpu: 0.0.40
codegen_flags: <defaults>
</compile_context>

<pallas_src>
import functools

import jax
import jax.numpy as jnp
import numpy as np
from jax import lax
from jax.experimental import pallas as pl
from jax.experimental.pallas import tpu as pltpu


def _round_up(x, m):
    return ((x + m - 1) // m) * m


# --------------------------- capability probes ------------------------------
@functools.lru_cache(maxsize=None)
def _roll_mode():
    """Determine pltpu.roll's rotation convention with a tiny probe kernel.

    Returns "add" if pltpu.roll(x, s, 0)[m] == x[(m + s) % M],
            "sub" if pltpu.roll(x, s, 0)[m] == x[(m - s) % M]  (np.roll),
            "jnp" if pltpu.roll is unusable (fall back to jnp.roll).
    """
    try:
        def k(x_ref, o_ref):
            o_ref[...] = pltpu.roll(x_ref[...], 1, axis=0)
        x = lax.broadcasted_iota(jnp.float32, (8, 128), 0)
        y = pl.pallas_call(
            k, out_shape=jax.ShapeDtypeStruct((8, 128), jnp.float32))(x)
        v = float(np.asarray(y)[0, 0])
        if v == 1.0:
            return "add"
        if v == 7.0:
            return "sub"
        return "jnp"
    except Exception:
        return "jnp"


@functools.lru_cache(maxsize=None)
def _single_buffering_supported():
    """Probe pipeline_mode=pl.Buffered(1) (single-buffered resident blocks)."""
    try:
        def k(a_ref, b_ref, o_ref):
            o_ref[...] = a_ref[...] + b_ref[...]
        a = jnp.arange(16 * 128, dtype=jnp.float32).reshape(16, 128)
        b = jnp.ones((8, 128), jnp.float32)
        out = pl.pallas_call(
            k,
            out_shape=jax.ShapeDtypeStruct((16, 128), jnp.float32),
            grid=(2,),
            in_specs=[
                pl.BlockSpec((8, 128), lambda i: (i, 0),
                             pipeline_mode=pl.Buffered(1)),
                pl.BlockSpec((8, 128), lambda i: (0, 0),
                             pipeline_mode=pl.Buffered(1)),
            ],
            out_specs=pl.BlockSpec((8, 128), lambda i: (i, 0)),
        )(a, b)
        return bool(jnp.allclose(out, a + 1.0))
    except Exception:
        return False


def _vmem_limit_bytes():
    """Generation-aware VMEM budget (~65% of physical per-core capacity)."""
    cap = 64 * 1024 * 1024
    try:
        cap = int(pltpu.get_tpu_info().vmem_capacity_bytes)
    except Exception:
        pass
    return max(32 * 1024 * 1024, int(cap * 0.65))


# ----------------------------- Pallas kernel --------------------------------
def _row_shift(arr, j, mode):
    """result[m, :] = arr[(m + j) % M, :]  (flat spatial shift by +j columns)."""
    if j == 0:
        return arr
    if mode == "add":
        return pltpu.roll(arr, j, axis=0)
    if mode == "sub":
        return pltpu.roll(arr, arr.shape[0] - j, axis=0)
    return jnp.roll(arr, -j, axis=0)


def _upconv_relu_kernel(x_ref, w_ref, b_ref, o_ref, *, th, wp, cin, roll_mode):
    """One (batch n, row-tile r) grid step.

    x_ref: (Hp+2, Wp, Cin)  bf16 zero-padded NHWC image of batch element n
                            (resident in VMEM across all row tiles of that n).
    w_ref: (9, Cin, C4p)    bf16 fused tap weights (parities folded into the
                            lane axis, zero-padded to a multiple of 128 lanes).
    b_ref: (1, C4p)         f32 parity-replicated, lane-padded bias.
    o_ref: (TH*Wp, C4p)     f32 parity-packed output row tile; doubles as the
                            accumulator so nothing huge lives in vregs.
    """
    r = pl.program_id(1)
    row0 = pl.multiple_of(r * th, th)
    first = True
    for i in range(3):
        # Full-width slab: only the major (row) axis is sliced, so the load and
        # the (TH, Wp, Cin) -> (TH*Wp, Cin) merge stay tile-aligned
        # (Wp % 16 == 0 for bf16) -- no per-tap misaligned relayouts.
        slab = x_ref[pl.ds(row0 + i, th), :, :].reshape(th * wp, cin)
        for j in range(3):
            contrib = jnp.dot(slab, w_ref[3 * i + j],
                              preferred_element_type=jnp.float32)
            contrib = _row_shift(contrib, j, roll_mode)  # +j column shift (XLU)
            if first:
                o_ref[...] = contrib
                first = False
            else:
                o_ref[...] += contrib
    o_ref[...] = jnp.maximum(o_ref[...] + b_ref[...], 0.0)   # bias + ReLU


def _upconv_relu_pallas(xp, w_fused, bias2d, *, TH, single_buffer, roll_mode):
    """xp: (N, Hp+2, Wp, Cin) bf16; w_fused: (9, Cin, C4p) bf16;
    bias2d: (1, C4p) f32.  Returns parity-packed (N, Hp*Wp, C4p) f32."""
    N, Hp2, Wp, Cin = xp.shape
    Hp = Hp2 - 2
    C4p = w_fused.shape[-1]
    n_tiles = Hp // TH

    def resident(block_shape, index_map):
        if single_buffer:
            return pl.BlockSpec(block_shape, index_map,
                                pipeline_mode=pl.Buffered(1))
        return pl.BlockSpec(block_shape, index_map)

    kernel = functools.partial(_upconv_relu_kernel, th=TH, wp=Wp, cin=Cin,
                               roll_mode=roll_mode)
    return pl.pallas_call(
        kernel,
        out_shape=jax.ShapeDtypeStruct((N, Hp * Wp, C4p), jnp.float32),
        grid=(N, n_tiles),                   # batch outer, row tiles inner
        in_specs=[
            # Whole padded image of batch element n: index_map ignores r so it
            # stays resident in VMEM across all row tiles of that image.
            resident((None, Hp + 2, Wp, Cin), lambda n, r: (n, 0, 0, 0)),
            resident((9, Cin, C4p), lambda n, r: (0, 0, 0)),
            resident((1, C4p), lambda n, r: (0, 0)),
        ],
        out_specs=pl.BlockSpec((None, TH * Wp, C4p), lambda n, r: (n, r, 0)),
        compiler_params=pltpu.CompilerParams(
            dimension_semantics=("parallel", "parallel"),
            vmem_limit_bytes=_vmem_limit_bytes()),
    )(xp, w_fused, bias2d)


def _pick_row_tile(H, Wp, N, target_rows):
    """TH such that TH*Wp ~ target_rows (512-1024 sweet spot), keeping >= 2
    total grid steps when possible so both v7x TensorCores get work."""
    th = max(1, min(H, target_rows // Wp))
    n_tiles = -(-H // th)
    if N * n_tiles < 2 and H > 1:
        th = -(-H // 2)
    return th


# ------------------------------- Module port --------------------------------
class UpPallas:
    """Pallas port of `up(input_nc, output_nc, use_bias=True, use_BN=False, out)`.

    ConvTranspose2d(kernel=4, stride=2, padding=1) + ReLU; if not `out`, the
    result is concatenated with x2 along the channel dim (NCHW).
    # TODO(synk): use_BN=True (training-mode BatchNorm2d batch statistics) is
    # not implemented; at inference it folds into the conv weight/bias.
    """

    def __init__(self, input_nc, output_nc, key, out=False, target_rows=1024):
        self.cin = int(input_nc)
        self.cout = int(output_nc)
        self.out = out
        self.target_rows = int(target_rows)
        kw, kb = jax.random.split(key)
        fan = input_nc * 4 * 4
        bound = 1.0 / np.sqrt(fan)
        # PyTorch ConvTranspose2d weight layout: (Cin, Cout, kH, kW)
        self.weight = jax.random.uniform(
            kw, (input_nc, output_nc, 4, 4), jnp.float32, -bound, bound)
        self.bias = jax.random.uniform(
            kb, (output_nc,), jnp.float32, -bound, bound)
        # Lane-dense (multiple-of-128) fused parity weights / bias; bf16 operands.
        self.c4 = 4 * self.cout
        self.c4p = _round_up(self.c4, 128)
        self.w_fused = self._fused_weights()                 # (9, Cin, C4p) bf16
        bf = np.zeros((1, self.c4p), np.float32)
        bf[0, :self.c4] = np.tile(np.asarray(self.bias), 4)
        self.b_fused = jnp.asarray(bf)

    def _fused_weights(self):
        # Output at (2h+ph, 2w+pw, co) = sum_{dr,dc in {0,1}} xp[h+ph+dr, w+pw+dc, ci]
        #   * weight[ci, co, 3-ph-2dr, 3-pw-2dc]   (xp = x zero-padded by 1).
        # Tap (i, j) = (ph+dr, pw+dc) in {0,1,2}^2; parity p = 2*ph+pw is packed
        # into the output-channel (lane) axis; taps a parity does not use are 0.
        Cin, Cout = self.cin, self.cout
        wq = np.asarray(self.weight.astype(jnp.bfloat16).astype(jnp.float32))
        wf = np.zeros((9, Cin, self.c4p), np.float32)
        for ph in range(2):
            for pw in range(2):
                p = ph * 2 + pw
                for dr in range(2):
                    for dc in range(2):
                        i, j = ph + dr, pw + dc
                        wf[3 * i + j, :, p * Cout:(p + 1) * Cout] = \
                            wq[:, :, 3 - ph - 2 * dr, 3 - pw - 2 * dc]
        return jnp.asarray(wf, dtype=jnp.bfloat16)

    def __call__(self, x1, x2=None):
        N, Cin, H, W = x1.shape
        assert Cin == self.cin
        Cout = self.cout

        Wp = _round_up(W + 2, 16)            # alignment-friendly padded width
        TH = _pick_row_tile(H, Wp, N, self.target_rows)
        n_tiles = -(-H // TH)
        Hp = n_tiles * TH                     # padded so TH always divides

        # NCHW -> NHWC, bf16 cast, zero-pad (1-px halo + alignment padding);
        # XLA fuses transpose+cast+pad into a single copy.
        # TODO(synk): an NCHW-native kernel input would remove this HBM pass.
        x_nhwc = jnp.transpose(x1, (0, 2, 3, 1)).astype(jnp.bfloat16)
        xp = jnp.pad(x_nhwc, ((0, 0), (1, Hp - H + 1), (1, Wp - W - 1), (0, 0)))

        sb = _single_buffering_supported()
        rm = _roll_mode()
        attempts = [(sb, rm)]
        if sb:
            attempts.append((False, rm))
        if rm != "jnp":
            attempts.append((False, "jnp"))
        out_flat = None
        last_err = None
        for s, m in attempts:
            try:
                out_flat = _upconv_relu_pallas(
                    xp, self.w_fused, self.b_fused, TH=TH,
                    single_buffer=s, roll_mode=m)            # (N, Hp*Wp, C4p)
                break
            except Exception as e:                           # retry conservative
                last_err = e
        if out_flat is None:
            raise last_err

        # Strip alignment padding, de-interleave parities and convert to NCHW
        # in one fused XLA copy:
        # (n, h, w, ph, pw, co) -> (n, co, h, ph, w, pw) -> (N, Cout, 2H, 2W).
        y = out_flat.reshape(N, Hp, Wp, self.c4p)[:, :H, :W, :self.c4]
        y = y.reshape(N, H, W, 2, 2, Cout)
        y_nchw = jnp.transpose(y, (0, 5, 1, 3, 2, 4)).reshape(
            N, Cout, 2 * H, 2 * W)

        if self.out:
            return y_nchw
        # TODO(synk): fuse the concat by writing y into a preallocated
        # (N, Cout+C2, 2H, 2W) buffer via input_output_aliases.
        return jnp.concatenate([y_nchw, x2.astype(jnp.float32)], axis=1)


# --------------------------- pure-JAX reference -----------------------------
def _reference(x1, x2, weight, bias, out_flag):
    # ConvTranspose2d(k=4, s=2, p=1) == dilated conv with flipped/transposed
    # kernel.  Operands are bf16-rounded to mirror the kernel's bf16 MXU
    # inputs; accumulation is exact f32 (Precision.HIGHEST).
    xq = x1.astype(jnp.bfloat16).astype(jnp.float32)
    wq = weight.astype(jnp.bfloat16).astype(jnp.float32)
    w_conv = jnp.flip(jnp.transpose(wq, (1, 0, 2, 3)), axis=(2, 3))  # (Cout,Cin,4,4)
    y = lax.conv_general_dilated(
        xq, w_conv, window_strides=(1, 1), padding=[(2, 2), (2, 2)],
        lhs_dilation=(2, 2), rhs_dilation=(1, 1),
        dimension_numbers=("NCHW", "OIHW", "NCHW"),
        precision=lax.Precision.HIGHEST)
    y = y + bias.reshape(1, -1, 1, 1)
    y = jnp.maximum(y, 0.0)
    if out_flag:
        return y
    return jnp.concatenate([y, x2], axis=1)


if __name__ == "__main__":
    key = jax.random.PRNGKey(0)
    k_mod, k_mod2, k_x1, k_x2, k_a = jax.random.split(key, 5)

    # Config 1: concat path, batch 2, multiple row tiles (TH=4 -> grid (2, 4)).
    N, Cin, Cout, H, W = 2, 4, 4, 16, 16
    x1 = jax.random.normal(k_x1, (N, Cin, H, W), jnp.float32)
    x2 = jax.random.normal(k_x2, (N, Cout, 2 * H, 2 * W), jnp.float32)
    mod = UpPallas(Cin, Cout, k_mod, out=False, target_rows=128)
    y = jax.block_until_ready(mod(x1, x2))
    y_ref = _reference(x1, x2, mod.weight, mod.bias, out_flag=False)
    np.testing.assert_allclose(np.asarray(y), np.asarray(y_ref),
                               rtol=1e-4, atol=1e-4)
    assert y.shape == (N, 2 * Cout, 2 * H, 2 * W)

    # Config 2: `out=True` head, non-square spatial, odd channels (lane pad),
    # H not divisible by TH (padded tail tile), width padding (W=8 -> Wp=16).
    N2, Cin2, Cout2, H2, W2 = 1, 6, 5, 14, 8
    a1 = jax.random.normal(k_a, (N2, Cin2, H2, W2), jnp.float32)
    mod2 = UpPallas(Cin2, Cout2, k_mod2, out=True, target_rows=64)
    y2 = jax.block_until_ready(mod2(a1))
    y2_ref = _reference(a1, None, mod2.weight, mod2.bias, out_flag=True)
    np.testing.assert_allclose(np.asarray(y2), np.asarray(y2_ref),
                               rtol=1e-4, atol=1e-4)
    assert y2.shape == (N2, Cout2, 2 * H2, 2 * W2)

    print("KERNEL_OK")
</pallas_src>

<mosaic_0001>
module attributes {stable_mosaic.version = 11 : i64} {
  func.func @k(%arg0: i32, %arg1: memref<8x128xf32, #tpu.memory_space<vmem>>, %arg2: memref<8x128xf32, #tpu.memory_space<vmem>>, %arg3: memref<8x128xf32, #tpu.memory_space<vmem>>) attributes {dimension_semantics = [#tpu.dimension_semantics<arbitrary>], iteration_bounds = array<i64: 2>, scalar_prefetch = 0 : i64, scratch_operands = 0 : i64, tpu.core_type = #tpu.core_type<tc>, window_params = [{pipeline_mode = #tpu.pipeline_mode<synchronous>, transform_indices = @transform_0, window_bounds = array<i64: 8, 128>}, {pipeline_mode = #tpu.pipeline_mode<synchronous>, transform_indices = @transform_1, window_bounds = array<i64: 8, 128>}, {transform_indices = @transform_2, window_bounds = array<i64: 8, 128>}]} {
    %c0 = arith.constant 0 : index
    %c0_0 = arith.constant 0 : index
    %0 = vector.load %arg1[%c0, %c0_0] : memref<8x128xf32, #tpu.memory_space<vmem>>, vector<8x128xf32>
    %c0_1 = arith.constant 0 : index
    %c0_2 = arith.constant 0 : index
    %1 = vector.load %arg2[%c0_1, %c0_2] : memref<8x128xf32, #tpu.memory_space<vmem>>, vector<8x128xf32>
    %2 = arith.addf %0, %1 : vector<8x128xf32>
    %c0_3 = arith.constant 0 : index
    %c0_4 = arith.constant 0 : index
    %3 = vector.load %arg3[%c0_3, %c0_4] : memref<8x128xf32, #tpu.memory_space<vmem>>, vector<8x128xf32>
    tpu.vector_store %arg3[%c0_3, %c0_4], %2 {strides = array<i32>} : memref<8x128xf32, #tpu.memory_space<vmem>>, vector<8x128xf32>,
    return
  }
  func.func @transform_0(%arg0: i32) -> (i32, i32) {
    %c0_i32 = arith.constant 0 : i32
    %c0_i32_0 = arith.constant 0 : i32
    return %arg0, %c0_i32 : i32, i32
  }
  func.func @transform_1(%arg0: i32) -> (i32, i32) {
    %c0_i32 = arith.constant 0 : i32
    %c0_i32_0 = arith.constant 0 : i32
    %c0_i32_1 = arith.constant 0 : i32
    return %c0_i32, %c0_i32_0 : i32, i32
  }
  func.func @transform_2(%arg0: i32) -> (i32, i32) {
    %c0_i32 = arith.constant 0 : i32
    %c0_i32_0 = arith.constant 0 : i32
    return %arg0, %c0_i32 : i32, i32
  }
}

module attributes {stable_mosaic.version = 11 : i64} {
  func.func @k(%arg0: memref<8x128xf32, #tpu.memory_space<vmem>>, %arg1: memref<8x128xf32, #tpu.memory_space<vmem>>) attributes {dimension_semantics = [], scalar_prefetch = 0 : i64, scratch_operands = 0 : i64, tpu.core_type = #tpu.core_type<tc>} {
    %c0 = arith.constant 0 : index
    %c0_0 = arith.constant 0 : index
    %0 = vector.load %arg0[%c0, %c0_0] : memref<8x128xf32, #tpu.memory_space<vmem>>, vector<8x128xf32>
    %c1_i32 = arith.constant 1 : i32
    %1 = tpu.dynamic_rotate %0 by %c1_i32 dim 0 : vector<8x128xf32>, i32 -> vector<8x128xf32>
    %c0_1 = arith.constant 0 : index
    %c0_2 = arith.constant 0 : index
    %2 = vector.load %arg1[%c0_1, %c0_2] : memref<8x128xf32, #tpu.memory_space<vmem>>, vector<8x128xf32>
    tpu.vector_store %arg1[%c0_1, %c0_2], %1 {strides = array<i32>} : memref<8x128xf32, #tpu.memory_space<vmem>>, vector<8x128xf32>,
    return
  }
}

module attributes {stable_mosaic.version = 11 : i64} {
  func.func @_upconv_relu_kernel(%arg0: i32, %arg1: i32, %arg2: memref<1x18x32x4xbf16, #tpu.memory_space<vmem>>, %arg3: memref<9x4x128xbf16, #tpu.memory_space<vmem>>, %arg4: memref<1x128xf32, #tpu.memory_space<vmem>>, %arg5: memref<1x128x128xf32, #tpu.memory_space<vmem>>) attributes {dimension_semantics = [#tpu.dimension_semantics<parallel>, #tpu.dimension_semantics<parallel>], iteration_bounds = array<i64: 2, 4>, scalar_prefetch = 0 : i64, scratch_operands = 0 : i64, tpu.core_type = #tpu.core_type<tc>, window_params = [{transform_indices = @transform_0, window_bounds = array<i64: 1, 18, 32, 4>}, {pipeline_mode = #tpu.pipeline_mode<synchronous>, transform_indices = @transform_1, window_bounds = array<i64: 9, 4, 128>}, {pipeline_mode = #tpu.pipeline_mode<synchronous>, transform_indices = @transform_2, window_bounds = array<i64: 1, 128>}, {transform_indices = @transform_3, window_bounds = array<i64: 1, 128, 128>}]} {
    %c4_i32 = arith.constant 4 : i32
    %0 = arith.muli %arg1, %c4_i32 : i32
    %1 = tpu.assume_multiple %0, 4 : i32
    %c0_i32 = arith.constant 0 : i32
    %2 = arith.addi %1, %c0_i32 : i32
    %c0 = arith.constant 0 : index
    %3 = arith.index_cast %2 : i32 to index
    %c0_0 = arith.constant 0 : index
    %c0_1 = arith.constant 0 : index
    %4 = vector.load %arg2[%c0, %3, %c0_0, %c0_1] : memref<1x18x32x4xbf16, #tpu.memory_space<vmem>>, vector<1x4x32x4xbf16>
    %5 = vector.shape_cast %4 : vector<1x4x32x4xbf16> to vector<4x32x4xbf16>
    %6 = vector.shape_cast %5 : vector<4x32x4xbf16> to vector<128x4xbf16>
    %c0_2 = arith.constant 0 : index
    %c0_3 = arith.constant 0 : index
    %c0_4 = arith.constant 0 : index
    %7 = vector.load %arg3[%c0_2, %c0_3, %c0_4] : memref<9x4x128xbf16, #tpu.memory_space<vmem>>, vector<1x4x128xbf16>
    %8 = vector.shape_cast %7 : vector<1x4x128xbf16> to vector<4x128xbf16>
    %cst = arith.constant dense<0.000000e+00> : vector<128x128xf32>
    %9 = tpu.matmul %6, %8, %cst {dimension_numbers = #tpu.dot_dimension_numbers<[1], [0], [0], [1], [0, 0, 1, 1], [], []>} : vector<128x4xbf16>, vector<4x128xbf16>, vector<128x128xf32> -> vector<128x128xf32>
    %c0_5 = arith.constant 0 : index
    %c0_6 = arith.constant 0 : index
    %c0_7 = arith.constant 0 : index
    %10 = vector.load %arg5[%c0_5, %c0_6, %c0_7] : memref<1x128x128xf32, #tpu.memory_space<vmem>>, vector<1x128x128xf32>
    %11 = vector.shape_cast %10 : vector<1x128x128xf32> to vector<128x128xf32>
    %12 = vector.shape_cast %9 : vector<128x128xf32> to vector<1x128x128xf32>
    tpu.vector_store %arg5[%c0_5, %c0_6, %c0_7], %12 {strides = array<i32>} : memref<1x128x128xf32, #tpu.memory_space<vmem>>, vector<1x128x128xf32>,
    %c1 = arith.constant 1 : index
    %c0_8 = arith.constant 0 : index
    %c0_9 = arith.constant 0 : index
    %13 = vector.load %arg3[%c1, %c0_8, %c0_9] : memref<9x4x128xbf16, #tpu.memory_space<vmem>>, vector<1x4x128xbf16>
    %14 = vector.shape_cast %13 : vector<1x4x128xbf16> to vector<4x128xbf16>
    %cst_10 = arith.constant dense<0.000000e+00> : vector<128x128xf32>
    %15 = tpu.matmul %6, %14, %cst_10 {dimension_numbers = #tpu.dot_dimension_numbers<[1], [0], [0], [1], [0, 0, 1, 1], [], []>} : vector<128x4xbf16>, vector<4x128xbf16>, vector<128x128xf32> -> vector<128x128xf32>
    %16 = vector.extract_strided_slice %15 {offsets = [1, 0], sizes = [127, 128], strides = [1, 1]} : vector<128x128xf32> to vector<127x128xf32>
    %17 = vector.extract_strided_slice %15 {offsets = [0, 0], sizes = [1, 128], strides = [1, 1]} : vector<128x128xf32> to vector<1x128xf32>
    %18 = tpu.concatenate %16, %17 in 0 : vector<127x128xf32>, vector<1x128xf32> -> vector<128x128xf32>
    %c0_11 = arith.constant 0 : index
    %c0_12 = arith.constant 0 : index
    %c0_13 = arith.constant 0 : index
    %19 = vector.load %arg5[%c0_11, %c0_12, %c0_13] : memref<1x128x128xf32, #tpu.memory_space<vmem>>, vector<1x128x128xf32>
    %20 = vector.shape_cast %19 : vector<1x128x128xf32> to vector<128x128xf32>
    %21 = arith.addf %20, %18 : vector<128x128xf32>
    %c0_14 = arith.constant 0 : index
    %c0_15 = arith.constant 0 : index
    %c0_16 = arith.constant 0 : index
    %22 = vector.load %arg5[%c0_14, %c0_15, %c0_16] : memref<1x128x128xf32, #tpu.memory_space<vmem>>, vector<1x128x128xf32>
    %23 = vector.shape_cast %22 : vector<1x128x128xf32> to vector<128x128xf32>
    %24 = vector.shape_cast %21 : vector<128x128xf32> to vector<1x128x128xf32>
    tpu.vector_store %arg5[%c0_14, %c0_15, %c0_16], %24 {strides = array<i32>} : memref<1x128x128xf32, #tpu.memory_space<vmem>>, vector<1x128x128xf32>,
    %c2 = arith.constant 2 : index
    %c0_17 = arith.constant 0 : index
    %c0_18 = arith.constant 0 : index
    %25 = vector.load %arg3[%c2, %c0_17, %c0_18] : memref<9x4x128xbf16, #tpu.memory_space<vmem>>, vector<1x4x128xbf16>
    %26 = vector.shape_cast %25 : vector<1x4x128xbf16> to vector<4x128xbf16>
    %cst_19 = arith.constant dense<0.000000e+00> : vector<128x128xf32>
    %27 = tpu.matmul %6, %26, %cst_19 {dimension_numbers = #tpu.dot_dimension_numbers<[1], [0], [0], [1], [0, 0, 1, 1], [], []>} : vector<128x4xbf16>, vector<4x128xbf16>, vector<128x128xf32> -> vector<128x128xf32>
    %28 = vector.extract_strided_slice %27 {offsets = [2, 0], sizes = [126, 128], strides = [1, 1]} : vector<128x128xf32> to vector<126x128xf32>
    %29 = vector.extract_strided_slice %27 {offsets = [0, 0], sizes = [2, 128], strides = [1, 1]} : vector<128x128xf32> to vector<2x128xf32>
    %30 = tpu.concatenate %28, %29 in 0 : vector<126x128xf32>, vector<2x128xf32> -> vector<128x128xf32>
    %c0_20 = arith.constant 0 : index
    %c0_21 = arith.constant 0 : index
    %c0_22 = arith.constant 0 : index
    %31 = vector.load %arg5[%c0_20, %c0_21, %c0_22] : memref<1x128x128xf32, #tpu.memory_space<vmem>>, vector<1x128x128xf32>
    %32 = vector.shape_cast %31 : vector<1x128x128xf32> to vector<128x128xf32>
    %33 = arith.addf %32, %30 : vector<128x128xf32>
    %c0_23 = arith.constant 0 : index
    %c0_24 = arith.constant 0 : index
    %c0_25 = arith.constant 0 : index
    %34 = vector.load %arg5[%c0_23, %c0_24, %c0_25] : memref<1x128x128xf32, #tpu.memory_space<vmem>>, vector<1x128x128xf32>
    %35 = vector.shape_cast %34 : vector<1x128x128xf32> to vector<128x128xf32>
    %36 = vector.shape_cast %33 : vector<128x128xf32> to vector<1x128x128xf32>
    tpu.vector_store %arg5[%c0_23, %c0_24, %c0_25], %36 {strides = array<i32>} : memref<1x128x128xf32, #tpu.memory_space<vmem>>, vector<1x128x128xf32>,
    %c1_i32 = arith.constant 1 : i32
    %37 = arith.addi %1, %c1_i32 : i32
    %c0_26 = arith.constant 0 : index
    %38 = arith.index_cast %37 : i32 to index
    %c0_27 = arith.constant 0 : index
    %c0_28 = arith.constant 0 : index
    %39 = vector.load %arg2[%c0_26, %38, %c0_27, %c0_28] : memref<1x18x32x4xbf16, #tpu.memory_space<vmem>>, vector<1x4x32x4xbf16>
    %40 = vector.shape_cast %39 : vector<1x4x32x4xbf16> to vector<4x32x4xbf16>
    %41 = vector.shape_cast %40 : vector<4x32x4xbf16> to vector<128x4xbf16>
    %c3 = arith.constant 3 : index
    %c0_29 = arith.constant 0 : index
    %c0_30 = arith.constant 0 : index
    %42 = vector.load %arg3[%c3, %c0_29, %c0_30] : memref<9x4x128xbf16, #tpu.memory_space<vmem>>, vector<1x4x128xbf16>
    %43 = vector.shape_cast %42 : vector<1x4x128xbf16> to vector<4x128xbf16>
    %cst_31 = arith.constant dense<0.000000e+00> : vector<128x128xf32>
    %44 = tpu.matmul %41, %43, %cst_31 {dimension_numbers = #tpu.dot_dimension_numbers<[1], [0], [0], [1], [0, 0, 1, 1], [], []>} : vector<128x4xbf16>, vector<4x128xbf16>, vector<128x128xf32> -> vector<128x128xf32>
    %c0_32 = arith.constant 0 : index
    %c0_33 = arith.constant 0 : index
    %c0_34 = arith.constant 0 : index
    %45 = vector.load %arg5[%c0_32, %c0_33, %c0_34] : memref<1x128x128xf32, #tpu.memory_space<vmem>>, vector<1x128x128xf32>
    %46 = vector.shape_cast %45 : vector<1x128x128xf32> to vector<128x128xf32>
    %47 = arith.addf %46, %44 : vector<128x128xf32>
    %c0_35 = arith.constant 0 : index
    %c0_36 = arith.constant 0 : index
    %c0_37 = arith.constant 0 : index
    %48 = vector.load %arg5[%c0_35, %c0_36, %c0_37] : memref<1x128x128xf32, #tpu.memory_space<vmem>>, vector<1x128x128xf32>
    %49 = vector.shape_cast %48 : vector<1x128x128xf32> to vector<128x128xf32>
    %50 = vector.shape_cast %47 : vector<128x128xf32> to vector<1x128x128xf32>
    tpu.vector_store %arg5[%c0_35, %c0_36, %c0_37], %50 {strides = array<i32>} : memref<1x128x128xf32, #tpu.memory_space<vmem>>, vector<1x128x128xf32>,
    %c4 = arith.constant 4 : index
    %c0_38 = arith.constant 0 : index
    %c0_39 = arith.constant 0 : index
    %51 = vector.load %arg3[%c4, %c0_38, %c0_39] : memref<9x4x128xbf16, #tpu.memory_space<vmem>>, vector<1x4x128xbf16>
    %52 = vector.shape_cast %51 : vector<1x4x128xbf16> to vector<4x128xbf16>
    %cst_40 = arith.constant dense<0.000000e+00> : vector<128x128xf32>
    %53 = tpu.matmul %41, %52, %cst_40 {dimension_numbers = #tpu.dot_dimension_numbers<[1], [0], [0], [1], [0, 0, 1, 1], [], []>} : vector<128x4xbf16>, vector<4x128xbf16>, vector<128x128xf32> -> vector<128x128xf32>
    %54 = vector.extract_strided_slice %53 {offsets = [1, 0], sizes = [127, 128], strides = [1, 1]} : vector<128x128xf32> to vector<127x128xf32>
    %55 = vector.extract_strided_slice %53 {offsets = [0, 0], sizes = [1, 128], strides = [1, 1]} : vector<128x128xf32> to vector<1x128xf32>
    %56 = tpu.concatenate %54, %55 in 0 : vector<127x128xf32>, vector<1x128xf32> -> vector<128x128xf32>
    %c0_41 = arith.constant 0 : index
    %c0_42 = arith.constant 0 : index
    %c0_43 = arith.constant 0 : index
    %57 = vector.load %arg5[%c0_41, %c0_42, %c0_43] : memref<1x128x128xf32, #tpu.memory_space<vmem>>, vector<1x128x128xf32>
    %58 = vector.shape_cast %57 : vector<1x128x128xf32> to vector<128x128xf32>
    %59 = arith.addf %58, %56 : vector<128x128xf32>
    %c0_44 = arith.constant 0 : index
    %c0_45 = arith.constant 0 : index
    %c0_46 = arith.constant 0 : index
    %60 = vector.load %arg5[%c0_44, %c0_45, %c0_46] : memref<1x128x128xf32, #tpu.memory_space<vmem>>, vector<1x128x128xf32>
    %61 = vector.shape_cast %60 : vector<1x128x128xf32> to vector<128x128xf32>
    %62 = vector.shape_cast %59 : vector<128x128xf32> to vector<1x128x128xf32>
    tpu.vector_store %arg5[%c0_44, %c0_45, %c0_46], %62 {strides = array<i32>} : memref<1x128x128xf32, #tpu.memory_space<vmem>>, vector<1x128x128xf32>,
    %c5 = arith.constant 5 : index
    %c0_47 = arith.constant 0 : index
    %c0_48 = arith.constant 0 : index
    %63 = vector.load %arg3[%c5, %c0_47, %c0_48] : memref<9x4x128xbf16, #tpu.memory_space<vmem>>, vector<1x4x128xbf16>
    %64 = vector.shape_cast %63 : vector<1x4x128xbf16> to vector<4x128xbf16>
    %cst_49 = arith.constant dense<0.000000e+00> : vector<128x128xf32>
    %65 = tpu.matmul %41, %64, %cst_49 {dimension_numbers = #tpu.dot_dimension_numbers<[1], [0], [0], [1], [0, 0, 1, 1], [], []>} : vector<128x4xbf16>, vector<4x128xbf16>, vector<128x128xf32> -> vector<128x128xf32>
    %66 = vector.extract_strided_slice %65 {offsets = [2, 0], sizes = [126, 128], strides = [1, 1]} : vector<128x128xf32> to vector<126x128xf32>
    %67 = vector.extract_strided_slice %65 {offsets = [0, 0], sizes = [2, 128], strides = [1, 1]} : vector<128x128xf32> to vector<2x128xf32>
    %68 = tpu.concatenate %66, %67 in 0 : vector<126x128xf32>, vector<2x128xf32> -> vector<128x128xf32>
    %c0_50 = arith.constant 0 : index
    %c0_51 = arith.constant 0 : index
    %c0_52 = arith.constant 0 : index
    %69 = vector.load %arg5[%c0_50, %c0_51, %c0_52] : memref<1x128x128xf32, #tpu.memory_space<vmem>>, vector<1x128x128xf32>
    %70 = vector.shape_cast %69 : vector<1x128x128xf32> to vector<128x128xf32>
    %71 = arith.addf %70, %68 : vector<128x128xf32>
    %c0_53 = arith.constant 0 : index
    %c0_54 = arith.constant 0 : index
    %c0_55 = arith.constant 0 : index
    %72 = vector.load %arg5[%c0_53, %c0_54, %c0_55] : memref<1x128x128xf32, #tpu.memory_space<vmem>>, vector<1x128x128xf32>
    %73 = vector.shape_cast %72 : vector<1x128x128xf32> to vector<128x128xf32>
    %74 = vector.shape_cast %71 : vector<128x128xf32> to vector<1x128x128xf32>
    tpu.vector_store %arg5[%c0_53, %c0_54, %c0_55], %74 {strides = array<i32>} : memref<1x128x128xf32, #tpu.memory_space<vmem>>, vector<1x128x128xf32>,
    %c2_i32 = arith.constant 2 : i32
    %75 = arith.addi %1, %c2_i32 : i32
    %c0_56 = arith.constant 0 : index
    %76 = arith.index_cast %75 : i32 to index
    %c0_57 = arith.constant 0 : index
    %c0_58 = arith.constant 0 : index
    %77 = vector.load %arg2[%c0_56, %76, %c0_57, %c0_58] : memref<1x18x32x4xbf16, #tpu.memory_space<vmem>>, vector<1x4x32x4xbf16>
    %78 = vector.shape_cast %77 : vector<1x4x32x4xbf16> to vector<4x32x4xbf16>
    %79 = vector.shape_cast %78 : vector<4x32x4xbf16> to vector<128x4xbf16>
    %c6 = arith.constant 6 : index
    %c0_59 = arith.constant 0 : index
    %c0_60 = arith.constant 0 : index
    %80 = vector.load %arg3[%c6, %c0_59, %c0_60] : memref<9x4x128xbf16, #tpu.memory_space<vmem>>, vector<1x4x128xbf16>
    %81 = vector.shape_cast %80 : vector<1x4x128xbf16> to vector<4x128xbf16>
    %cst_61 = arith.constant dense<0.000000e+00> : vector<128x128xf32>
    %82 = tpu.matmul %79, %81, %cst_61 {dimension_numbers = #tpu.dot_dimension_numbers<[1], [0], [0], [1], [0, 0, 1, 1], [], []>} : vector<128x4xbf16>, vector<4x128xbf16>, vector<128x128xf32> -> vector<128x128xf32>
    %c0_62 = arith.constant 0 : index
    %c0_63 = arith.constant 0 : index
    %c0_64 = arith.constant 0 : index
    %83 = vector.load %arg5[%c0_62, %c0_63, %c0_64] : memref<1x128x128xf32, #tpu.memory_space<vmem>>, vector<1x128x128xf32>
    %84 = vector.shape_cast %83 : vector<1x128x128xf32> to vector<128x128xf32>
    %85 = arith.addf %84, %82 : vector<128x128xf32>
    %c0_65 = arith.constant 0 : index
    %c0_66 = arith.constant 0 : index
    %c0_67 = arith.constant 0 : index
    %86 = vector.load %arg5[%c0_65, %c0_66, %c0_67] : memref<1x128x128xf32, #tpu.memory_space<vmem>>, vector<1x128x128xf32>
    %87 = vector.shape_cast %86 : vector<1x128x128xf32> to vector<128x128xf32>
    %88 = vector.shape_cast %85 : vector<128x128xf32> to vector<1x128x128xf32>
    tpu.vector_store %arg5[%c0_65, %c0_66, %c0_67], %88 {strides = array<i32>} : memref<1x128x128xf32, #tpu.memory_space<vmem>>, vector<1x128x128xf32>,
    %c7 = arith.constant 7 : index
    %c0_68 = arith.constant 0 : index
    %c0_69 = arith.constant 0 : index
    %89 = vector.load %arg3[%c7, %c0_68, %c0_69] : memref<9x4x128xbf16, #tpu.memory_space<vmem>>, vector<1x4x128xbf16>
    %90 = vector.shape_cast %89 : vector<1x4x128xbf16> to vector<4x128xbf16>
    %cst_70 = arith.constant dense<0.000000e+00> : vector<128x128xf32>
    %91 = tpu.matmul %79, %90, %cst_70 {dimension_numbers = #tpu.dot_dimension_numbers<[1], [0], [0], [1], [0, 0, 1, 1], [], []>} : vector<128x4xbf16>, vector<4x128xbf16>, vector<128x128xf32> -> vector<128x128xf32>
    %92 = vector.extract_strided_slice %91 {offsets = [1, 0], sizes = [127, 128], strides = [1, 1]} : vector<128x128xf32> to vector<127x128xf32>
    %93 = vector.extract_strided_slice %91 {offsets = [0, 0], sizes = [1, 128], strides = [1, 1]} : vector<128x128xf32> to vector<1x128xf32>
    %94 = tpu.concatenate %92, %93 in 0 : vector<127x128xf32>, vector<1x128xf32> -> vector<128x128xf32>
    %c0_71 = arith.constant 0 : index
    %c0_72 = arith.constant 0 : index
    %c0_73 = arith.constant 0 : index
    %95 = vector.load %arg5[%c0_71, %c0_72, %c0_73] : memref<1x128x128xf32, #tpu.memory_space<vmem>>, vector<1x128x128xf32>
    %96 = vector.shape_cast %95 : vector<1x128x128xf32> to vector<128x128xf32>
    %97 = arith.addf %96, %94 : vector<128x128xf32>
    %c0_74 = arith.constant 0 : index
    %c0_75 = arith.constant 0 : index
    %c0_76 = arith.constant 0 : index
    %98 = vector.load %arg5[%c0_74, %c0_75, %c0_76] : memref<1x128x128xf32, #tpu.memory_space<vmem>>, vector<1x128x128xf32>
    %99 = vector.shape_cast %98 : vector<1x128x128xf32> to vector<128x128xf32>
    %100 = vector.shape_cast %97 : vector<128x128xf32> to vector<1x128x128xf32>
    tpu.vector_store %arg5[%c0_74, %c0_75, %c0_76], %100 {strides = array<i32>} : memref<1x128x128xf32, #tpu.memory_space<vmem>>, vector<1x128x128xf32>,
    %c8 = arith.constant 8 : index
    %c0_77 = arith.constant 0 : index
    %c0_78 = arith.constant 0 : index
    %101 = vector.load %arg3[%c8, %c0_77, %c0_78] : memref<9x4x128xbf16, #tpu.memory_space<vmem>>, vector<1x4x128xbf16>
    %102 = vector.shape_cast %101 : vector<1x4x128xbf16> to vector<4x128xbf16>
    %cst_79 = arith.constant dense<0.000000e+00> : vector<128x128xf32>
    %103 = tpu.matmul %79, %102, %cst_79 {dimension_numbers = #tpu.dot_dimension_numbers<[1], [0], [0], [1], [0, 0, 1, 1], [], []>} : vector<128x4xbf16>, vector<4x128xbf16>, vector<128x128xf32> -> vector<128x128xf32>
    %104 = vector.extract_strided_slice %103 {offsets = [2, 0], sizes = [126, 128], strides = [1, 1]} : vector<128x128xf32> to vector<126x128xf32>
    %105 = vector.extract_strided_slice %103 {offsets = [0, 0], sizes = [2, 128], strides = [1, 1]} : vector<128x128xf32> to vector<2x128xf32>
    %106 = tpu.concatenate %104, %105 in 0 : vector<126x128xf32>, vector<2x128xf32> -> vector<128x128xf32>
    %c0_80 = arith.constant 0 : index
    %c0_81 = arith.constant 0 : index
    %c0_82 = arith.constant 0 : index
    %107 = vector.load %arg5[%c0_80, %c0_81, %c0_82] : memref<1x128x128xf32, #tpu.memory_space<vmem>>, vector<1x128x128xf32>
    %108 = vector.shape_cast %107 : vector<1x128x128xf32> to vector<128x128xf32>
    %109 = arith.addf %108, %106 : vector<128x128xf32>
    %c0_83 = arith.constant 0 : index
    %c0_84 = arith.constant 0 : index
    %c0_85 = arith.constant 0 : index
    %110 = vector.load %arg5[%c0_83, %c0_84, %c0_85] : memref<1x128x128xf32, #tpu.memory_space<vmem>>, vector<1x128x128xf32>
    %111 = vector.shape_cast %110 : vector<1x128x128xf32> to vector<128x128xf32>
    %112 = vector.shape_cast %109 : vector<128x128xf32> to vector<1x128x128xf32>
    tpu.vector_store %arg5[%c0_83, %c0_84, %c0_85], %112 {strides = array<i32>} : memref<1x128x128xf32, #tpu.memory_space<vmem>>, vector<1x128x128xf32>,
    %c0_86 = arith.constant 0 : index
    %c0_87 = arith.constant 0 : index
    %c0_88 = arith.constant 0 : index
    %113 = vector.load %arg5[%c0_86, %c0_87, %c0_88] : memref<1x128x128xf32, #tpu.memory_space<vmem>>, vector<1x128x128xf32>
    %114 = vector.shape_cast %113 : vector<1x128x128xf32> to vector<128x128xf32>
    %c0_89 = arith.constant 0 : index
    %c0_90 = arith.constant 0 : index
    %115 = vector.load %arg4[%c0_89, %c0_90] : memref<1x128xf32, #tpu.memory_space<vmem>>, vector<1x128xf32>
    %116 = vector.broadcast %115 : vector<1x128xf32> to vector<128x128xf32>
    %117 = arith.addf %114, %116 : vector<128x128xf32>
    %cst_91 = arith.constant 0.000000e+00 : f32
    %118 = vector.broadcast %cst_91 : f32 to vector<128x128xf32>
    %119 = arith.maximumf %117, %118 : vector<128x128xf32>
    %c0_92 = arith.constant 0 : index
    %c0_93 = arith.constant 0 : index
    %c0_94 = arith.constant 0 : index
    %120 = vector.load %arg5[%c0_92, %c0_93, %c0_94] : memref<1x128x128xf32, #tpu.memory_space<vmem>>, vector<1x128x128xf32>
    %121 = vector.shape_cast %120 : vector<1x128x128xf32> to vector<128x128xf32>
    %122 = vector.shape_cast %119 : vector<128x128xf32> to vector<1x128x128xf32>
    tpu.vector_store %arg5[%c0_92, %c0_93, %c0_94], %122 {strides = array<i32>} : memref<1x128x128xf32, #tpu.memory_space<vmem>>, vector<1x128x128xf32>,
    return
  }
  func.func @transform_0(%arg0: i32, %arg1: i32) -> (i32, i32, i32, i32) {
    %c0_i32 = arith.constant 0 : i32
    %c0_i32_0 = arith.constant 0 : i32
    %c0_i32_1 = arith.constant 0 : i32
    %c0_i32_2 = arith.constant 0 : i32
    return %arg0, %c0_i32, %c0_i32_0, %c0_i32_1 : i32, i32, i32, i32
  }
  func.func @transform_1(%arg0: i32, %arg1: i32) -> (i32, i32, i32) {
    %c0_i32 = arith.constant 0 : i32
    %c0_i32_0 = arith.constant 0 : i32
    %c0_i32_1 = arith.constant 0 : i32
    %c0_i32_2 = arith.constant 0 : i32
    return %c0_i32, %c0_i32_0, %c0_i32_1 : i32, i32, i32
  }
  func.func @transform_2(%arg0: i32, %arg1: i32) -> (i32, i32) {
    %c0_i32 = arith.constant 0 : i32
    %c0_i32_0 = arith.constant 0 : i32
    %c0_i32_1 = arith.constant 0 : i32
    return %c0_i32, %c0_i32_0 : i32, i32
  }
  func.func @transform_3(%arg0: i32, %arg1: i32) -> (i32, i32, i32) {
    %c0_i32 = arith.constant 0 : i32
    %c0_i32_0 = arith.constant 0 : i32
    return %arg0, %arg1, %c0_i32 : i32, i32, i32
  }
}

</mosaic_0001>

<bundles_post_ra>
// kernel: tpu_custom_call.1
= control target key start
LH: loop header
LB: loop body
LE: loop exit
PB: predicated region body
PF: predicated region fallthrough
CT: control target
= control target key end

     0   :  { %7 = vsyncpa [#allocation3], 0  ;;  %s607_s0 = inlined_call_operand.hbm [shape: f32[16,128], index: 0, kind: input, shape index: {}]   ;;  %s608_s1 = inlined_call_operand.hbm [shape: f32[8,128], index: 1, kind: input, shape index: {}]   ;;  %s609_s2 = inlined_call_operand.hbm [shape: f32[16,128], index: 2, kind: output, shape index: {}]  }
   0x1   :  { %8 = vsyncpa [#allocation6], 0 }
   0x2   :  { %9 = vsyncpa [#allocation4], 0 }
   0x3   :  { %11 = vsyncpa [#allocation4 + $0x1], 0  ;;  %s453_s9 = smov 0   ;;  %s455_s10 = smov 0  }
   0x4   :  { %s457_s11 = smov 0   ;;  %s459_s12 = smov 0  }
   0x5 LB: > { %s474_s13 = sadd.s32 4294967295, %s433_s12   ;;  %s244_s14 = sadd.s32 4294967294, %s433_s12   ;;  %s433_s12 = sphi %s459_s12, %s632_s12   ;;  %s429_s11 = sphi %s457_s11, %s631_s11   ;;  %s425_s10 = sphi %s455_s10, %s630_s10   ;;  %s421_s9 = sphi %s453_s9, %s629_s9  }
   0x6   : > { %s478_s15 = sadd.s32 1, %s433_s12   ;;  %s24_s16 = sadd.s32 1, %s429_s11 }
   0x7   : > { %s21_s17 = ssub.s32 %s433_s12, %s478_s15  ;;  %p37_p0 = scmp.ne.s32.totalorder %s425_s10, %s421_s9 }
   0x8   : > { %p22_p1 = scmp.eq.s32.totalorder %s21_s17, 0  ;;  %p610_p2 = scmp.eq.s32.totalorder %s474_s13, 0 }
   0x9   : > { %p81_p3 = scmp.ne.s32.totalorder %s429_s11, %s425_s10  ;;  %p82_p4 = scmp.eq.s32.totalorder %s474_s13, 1 }
   0xa   : > { %s490_s18 = scalar_select %p22_p1, %s429_s11, %s24_s16  }
   0xb   : > { %p492_p5 = por %p82_p4, %p81_p3  ;;  %p88_p6 = scmp.eq.s32.totalorder %s244_s14, 1 }
   0xc   : > { %p245_p7 = scmp.ge.s32.totalorder %s433_s12, 1  ;;  %p499_p8 = por %p610_p2, %p37_p0 }
   0xd   : > { %s616_s19 = scalar_select %p492_p5, 1, 0 }
   0xe   : > { %s617_s20 = scalar_select %p499_p8, 1, 0 }
   0xf   : > { %p95_p9 = scmp.lt.s32.totalorder %s433_s12, 3  ;;  %p504_p10 = por %p88_p6, %p37_p0 }
  0x10   : > { %s246_s22 = sshll.u32 %s474_s13, 7  ;;  %s435_s24 = smov [#allocation2]  }
  0x11   : > { %s618_s21 = scalar_select %p504_p10, 1, 0 }
  0x12   : > { %p509_p11 = pnand %p245_p7, %p95_p9  ;;  %s110_s25 = sshll.u32 %s435_s24, 4  ;;  %s111_s25 = int_to_ptr.vmem [resolvable:$true] %s110_s25 }
  0x13   : > { %s108_s28 = scalar_lea.hbm %s607_s0, %s246_s22  ;;  %s436_s30 = smov [#allocation5]  }
  0x14   : > { %s619_s23 = scalar_select %p509_p11, 1, 0 }
  0x15   : > { %p263_p12 = pneg %p509_p11  ;;  %s121_s3 = sshll.u32 %s436_s30, 4  ;;  %s532_s3 = int_to_ptr.vmem [resolvable:$true] %s121_s3 }
  0x16   : > { %s311_s5 = scalar_lea.hbm %s108_s28, 128  ;;  %s316_s8 = scalar_lea.hbm %s607_s0, 256 }
  0x17   : > { %p522_p13 = pnand %p263_p12, %p499_p8  ;;  %p528_p0 = pnand %p263_p12, %p610_p2 }
  0x18   : > { %p312_p1 = scmp.ne.s32.totalorder %s108_s28, %s311_s5  ;;  %p317_p7 = scmp.lt.s32.totalorder %s108_s28, %s607_s0 }
  0x19   : > { %s621_s4 = scalar_select %p528_p0, 1, 0 }
  0x1a   : > { %p313_p3 = pneg %p522_p13  ;;  %p318_p9 = scmp.lt.s32.totalorder %s316_s8, %s311_s5 }
  0x1c   : > { %p314_p4 = pnand %p313_p3, %p312_p1  ;;  %p319_p12 = por %p318_p9, %p317_p7 }
  0x1e   : > { %p315_p6 = pneg %p314_p4 }
  0x20   : > { %p320_p2 = pnand %p319_p12, %p315_p6 }
  0x22   : > { %323 = shalt.err (!%p320_p2)
}
  0x23   : > { %s324_s17 = scalar_lea.vmem %s111_s25, 128  ;;  %p332_p11 = scmp.lt.s32.totalorder %s111_s25, %s111_s25 }
  0x24   : > { %p325_p10 = scmp.ne.s32.totalorder %s111_s25, %s324_s17  ;;  %p333_p0 = scmp.lt.s32.totalorder %s324_s17, %s324_s17 }
  0x26   : > { %p327_p5 = pnand %p325_p10, %p313_p3  ;;  %p334_p1 = por %p333_p0, %p332_p11 }
  0x28   : > { %p328_p8 = pneg %p327_p5 }
  0x2a   : > { %p335_p4 = pnand %p334_p1, %p328_p8 }
  0x2c   : > { %338 = shalt.err (!%p335_p4)
}
  0x2d   : > { %266 = dma.hbm_to_vmem [thread:$0]  (!%p522_p13), %s108_s28, 128, %s111_s25, [#allocation3]  }
  0x2e   : > { %p622_p7 = scmp.ne.s32.totalorder %s621_s4, 0  ;;  %s350_s24 = scalar_lea.vmem %s532_s3, 128 }
  0x2f   : > { %p351_p2 = scmp.ne.s32.totalorder %s532_s3, %s350_s24  ;;  %p358_p5 = scmp.lt.s32.totalorder %s532_s3, %s532_s3 }
  0x30   : > { %p341_p9 = pneg %p622_p7  ;;  %p359_p10 = scmp.lt.s32.totalorder %s350_s24, %s350_s24 }
  0x32   : > { %p353_p6 = pnand %p351_p2, %p341_p9  ;;  %p360_p3 = por %p359_p10, %p358_p5 }
  0x34   : > { %p354_p12 = pneg %p353_p6 }
  0x36   : > { %p361_p11 = pnand %p360_p3, %p354_p12 }
  0x38   : > { %364 = shalt.err (!%p361_p11)
}
  0x39   : > { %269 = dma.hbm_to_vmem [thread:$0]  (!%p622_p7), %s608_s1, 128, %s532_s3, [#allocation6]  }
  0x3a   : > { %p623_p8 = scmp.ne.s32.totalorder %s619_s23, 0 }
  0x3b   : > { %p624_p13 = scmp.ne.s32.totalorder (!%p623_p8), %s617_s20, 0 }
  0x3c   : > { %134 = sbr.rel (%p623_p8) target bundleno = 94 (0x5e), region = 28 }
  0x41   : > { %408 = dma.done.wait (%p624_p13), [#allocation3], 128  }
  0x42   : > { %410 = vsyncadd (%p624_p13), [#allocation3], 4294967168  ;;  %p625_p0 = scmp.eq.s32.totalorder %s474_s13, 0 }
  0x44   : > { %412 = dma.done.wait (%p625_p0), [#allocation6], 128   ;;  %p626_p1 = pmov %p625_p0 }
  0x45   : > { %s152_s25 = sand.u32 1, %s425_s10   ;;  %v155_v0 = vld [vmem:[#allocation2] sm:$0xff]  ;;  %v156_v1 = vld [vmem:[#allocation5] sm:$0xff]  ;;  %s572_s20 = scalar_lea.hbm %s609_s2, %s246_s22 }
  0x46   : > { %414 = vsyncadd (%p626_p1), [#allocation6], 4294967168  ;;  %s250_s28 = sshll.u32 %s152_s25, 3  ;;  %v157_v2 = vadd.f32 %v156_v1, %v155_v0  ;;  %s160_s4 = scalar_lea.sflag [#allocation4], %s152_s25 }
  0x47   : > { %s154_s29 = scalar_lea.vmem [#allocation7], %s250_s28  ;;  %p627_p7 = scmp.ne.s32.totalorder %s616_s19, 0 }
  0x48   : > { %s173_s23 = sshll.u32 %s154_s29, 4  ;;  %158 = vst [vmem:[%s154_s29] sm:$0xff] %v157_v2  ;;  %s437_s6 = smov [#allocation7]   ;;  %s174_s23 = int_to_ptr.vmem [resolvable:$true] %s173_s23 }
  0x49   : > { %s365_s5 = scalar_lea.vmem %s174_s23, 128  ;;  %s369_s7 = sshll.u32 %s437_s6, 4  ;;  %s370_s7 = int_to_ptr.vmem [resolvable:$false] %s369_s7 }
  0x4a   : > { %p366_p4 = scmp.ne.s32.totalorder %s174_s23, %s365_s5  ;;  %s371_s8 = scalar_lea.vmem %s370_s7, 256 }
  0x4b   : > { %p372_p6 = scmp.lt.s32.totalorder %s174_s23, %s370_s7  ;;  %p373_p12 = scmp.lt.s32.totalorder %s371_s8, %s365_s5 }
  0x4c   : > { %p367_p9 = pnand %p366_p4, %p627_p7 }
  0x4d   : > { %p374_p5 = por %p373_p12, %p372_p6 }
  0x4e   : > { %p368_p2 = pneg %p367_p9 }
  0x50   : > { %p375_p10 = pnand %p374_p5, %p368_p2 }
  0x52   : > { %378 = shalt.err (!%p375_p10)
}
  0x53   : > { %s379_s13 = scalar_lea.hbm %s572_s20, 128  ;;  %s383_s16 = scalar_lea.hbm %s609_s2, 256 }
  0x54   : > { %p380_p3 = scmp.ne.s32.totalorder %s572_s20, %s379_s13  ;;  %p384_p13 = scmp.lt.s32.totalorder %s572_s20, %s609_s2 }
  0x55   : > { %p385_p0 = scmp.lt.s32.totalorder %s383_s16, %s379_s13 }
  0x56   : > { %p381_p11 = pnand %p380_p3, %p627_p7 }
  0x57   : > { %p386_p1 = por %p385_p0, %p384_p13 }
  0x58   : > { %p382_p8 = pneg %p381_p11 }
  0x5a   : > { %p387_p4 = pnand %p386_p1, %p382_p8 }
  0x5c   : > { %390 = shalt.err (!%p387_p4)
}
  0x5d   : > { %261 = dma.vmem_to_hbm [thread:$0]  (%p627_p7), %s174_s23, 128, %s572_s20, %s160_s4  }
  0x5e PF: > { %p276_p9 = scmp.ge.s32.totalorder %s433_s12, 2  ;;  %s185_s26 = sand.u32 1, %s421_s9  }
  0x5f   : > { %p628_p2 = scmp.ne.s32.totalorder %s618_s21, 0  ;;  %s186_s27 = scalar_lea.sflag [#allocation4], %s185_s26 }
  0x61   : > { %p271_p6 = pnand %p276_p9, %p628_p2 }
  0x63   : > { %p272_p12 = pneg %p271_p6 }
  0x65   : > { %416 = dma.done.wait (%p272_p12), %s186_s27, 128  }
  0x66   : > { %418 = vsyncadd (%p272_p12), %s186_s27, 4294967168  ;;  %p14_p5 = scmp.ge.s32.totalorder %s478_s15, 4   ;;  %s629_s9 = smov %s425_s10 }
  0x67   : > { %s630_s10 = smov %s429_s11  ;;  %s631_s11 = smov %s490_s18 }
  0x68   : > { %s632_s12 = smov %s478_s15  ;;  %16 = sbr.rel (!%p14_p5) target bundleno = 5 (0x5), region = 70 }
  0x6d   :  { %191 = vsyncpa [#allocation3], 1 }
  0x6e   :  { %193 = vsyncpa [#allocation3 + $0x1], 1 }
  0x6f   :  { %194 = vsyncpa [#allocation6], 1 }
  0x70   :  { %195 = vsyncpa [#allocation4], 1 }
  0x71   :  { %197 = vsyncpa [#allocation4 + $0x1], 1 }

// kernel: tpu_custom_call.1
= control target key start
LH: loop header
LB: loop body
LE: loop exit
PB: predicated region body
PF: predicated region fallthrough
CT: control target
= control target key end

     0   :  { %6 = vsyncpa [#allocation3], 0  ;;  %s103_s0 = inlined_call_operand.hbm [shape: f32[8,128], index: 0, kind: input, shape index: {}]   ;;  %s104_s1 = inlined_call_operand.hbm [shape: f32[8,128], index: 1, kind: output, shape index: {}]  }
   0x1   :  { %7 = vsyncpa [#allocation4], 0  ;;  %s85_s6 = smov [#allocation2]  }
   0x2   :  { %s14_s7 = sshll.u32 %s85_s6, 4  ;;  %s15_s7 = int_to_ptr.vmem [resolvable:$true] %s14_s7 }
   0x3   :  { %s49_s8 = scalar_lea.vmem %s15_s7, 128  ;;  %p54_p1 = scmp.lt.s32.totalorder %s15_s7, %s15_s7 }
   0x4   :  { %p50_p0 = scmp.ne.s32.totalorder %s15_s7, %s49_s8  ;;  %p55_p2 = scmp.lt.s32.totalorder %s49_s8, %s49_s8 }
   0x6   :  { %p56_p3 = por %p55_p2, %p54_p1 }
   0x8   :  { %p57_p4 = pnand %p56_p3, %p50_p0 }
   0xa   :  { %60 = shalt.err (!%p57_p4)
}
   0xb   :  { %17 = dma.hbm_to_vmem [thread:$0]  %s103_s0, 128, %s15_s7, [#allocation3]  }
   0xc   :  { %81 = dma.done.wait [#allocation3], 128  }
   0xd   :  { %82 = vsyncadd [#allocation3], 4294967168  ;;  %s86_s11 = smov [#allocation5]   ;;  %v21_v0 = vld [vmem:[#allocation2] sm:$0xff] }
   0xe   :  { %s30_s12 = sshll.u32 %s86_s11, 4  ;;  %v22_v1 = vrot.slane %v21_v0, 7  ;;  %s31_s12 = int_to_ptr.vmem [resolvable:$true] %s30_s12 }
   0xf   :  { %s61_s13 = scalar_lea.vmem %s31_s12, 128  ;;  %p66_p6 = scmp.lt.s32.totalorder %s31_s12, %s31_s12 }
  0x10   :  { %23 = vst [vmem:[#allocation5] sm:$0xff] %v22_v1  ;;  %p62_p5 = scmp.ne.s32.totalorder %s31_s12, %s61_s13  ;;  %p67_p7 = scmp.lt.s32.totalorder %s61_s13, %s61_s13 }
  0x12   :  { %p68_p8 = por %p67_p7, %p66_p6 }
  0x14   :  { %p69_p9 = pnand %p68_p8, %p62_p5 }
  0x16   :  { %72 = shalt.err (!%p69_p9)
}
  0x17   :  { %33 = dma.vmem_to_hbm [thread:$0]  %s31_s12, 128, %s104_s1, [#allocation4]  }
  0x18   :  { %83 = dma.done.wait [#allocation4], 128  }
  0x19   :  { %84 = vsyncadd [#allocation4], 4294967168 }
  0x1a   :  { %37 = vsyncpa [#allocation3], 1 }
  0x1b   :  { %38 = vsyncpa [#allocation4], 1 }

// kernel: tpu_custom_call.1
= control target key start
LH: loop header
LB: loop body
LE: loop exit
PB: predicated region body
PF: predicated region fallthrough
CT: control target
= control target key end

     0   :  { %8 = vsyncpa [#allocation3], 0  ;;  %s3718_s0 = inlined_call_operand.vmem [shape: bf16[2,18,32,4], index: 0, kind: input, shape index: {}]   ;;  %s3719_s1 = inlined_call_operand.vmem [shape: bf16[9,4,128], index: 1, kind: input, shape index: {}]   ;;  %s3720_s2 = inlined_call_operand.vmem [shape: f32[1,128], index: 2, kind: input, shape index: {}]   ;;  %s3721_s3 = inlined_call_operand.hbm [shape: f32[2,512,128], index: 3, kind: output, shape index: {}]  }
   0x1   :  { %10 = vsyncpa [#allocation3 + $0x1], 0  ;;  %s2952_s12 = smov 0   ;;  %s2954_s13 = smov 0  }
   0x2   :  { %s2956_s14 = smov 0   ;;  %s2958_s15 = smov 0  }
   0x3   :  { %s2960_s16 = smov 0   ;;  %s2962_s17 = smov 0  }
   0x4   :  { %s2964_s18 = smov 0   ;;  %s2966_s19 = smov 0  }
   0x5 LB: > { %s2321_s20 = sadd.s32 4294967295, %s2927_s19   ;;  %s2322_s21 = sadd.s32 4294967294, %s2927_s19   ;;  %s2927_s19 = sphi %s2966_s19, %s16_s19   ;;  %s2923_s18 = sphi %s2964_s18, %s3738_s18   ;;  %s2919_s17 = sphi %s2962_s17, %s3737_s17   ;;  %s2915_s16 = sphi %s2960_s16, %s3736_s16   ;;  %s2911_s15 = sphi %s2958_s15, %s3735_s15   ;;  %s2907_s14 = sphi %s2956_s14, %s3734_s14   ;;  %s2903_s13 = sphi %s2954_s13, %s3733_s13   ;;  %s2899_s12 = sphi %s2952_s12, %s3732_s12  }
   0x6   : > { %s25_s22 = sadd.s32 1, %s2919_s17  ;;  %s28_s23 = sadd.s32 1, %s2923_s18 }
   0x7   : > { %p26_p0 = scmp.ge.s32.totalorder %s25_s22, 4  ;;  %p115_p1 = scmp.ne.s32.totalorder %s2907_s14, %s2903_s13 }
   0x8   : > { %p116_p2 = scmp.eq.s32.totalorder %s2321_s20, 7  ;;  %p121_p5 = scmp.ne.s32.totalorder %s2903_s13, %s2899_s12 }
   0x9   : > { %s3740_s22 = smov (%p26_p0, %s25_s22), 0  ;;  %s3742_s23 = smov (!%p26_p0, %s28_s23), %s2923_s18 }
   0xa   : > { %s101_s24 = ssub.s32 %s2919_s17, %s3740_s22  ;;  %p3003_p3 = por %p116_p2, %p115_p1 }
   0xb   : > { %p30_p4 = scmp.ge.s32.totalorder %s3742_s23, 2  ;;  %p122_p6 = scmp.eq.s32.totalorder %s2322_s21, 7 }
   0xc   : > { %p2325_p7 = scmp.ge.s32.totalorder %s2927_s19, 1  ;;  %p154_p9 = scmp.lt.s32.totalorder %s2927_s19, 9 }
   0xd   : > { %s3744_s23 = smov (%p30_p4, %s3742_s23), 0  ;;  %p3012_p8 = por %p122_p6, %p121_p5 }
   0xe   : > { %s100_s27 = ssub.s32 %s2923_s18, %s3744_s23  ;;  %s105_s28 = sadd.s32 1, %s2907_s14 }
   0xf   : > { %s102_s29 = sor.u32 %s101_s24, %s100_s27  ;;  %p155_p10 = pnand %p2325_p7, %p154_p9 }
  0x10   : > { %p103_p11 = scmp.eq.s32.totalorder %s102_s29, 0 }
  0x11   : > { %158 = sbr.rel (%p155_p10) target bundleno = 395 (0x18b), region = 32 }
  0x12   : > { %s3021_s30 = scalar_select %p103_p11, %s2907_s14, %s105_s28  }
  0x16   : > { %v205_v0 = vld [vmem:[%s3719_s1] sm:$0x3]  ;;  %vm271_vm0 = vcmask 1041408   ;;  %p178_p12 = scmp.lt.s32.totalorder %s2915_s16, 1  ;;  %v2347_v2 = vld [vmem:[%s3719_s1 + $0x2] sm:$0x3] }
  0x17   : > { %2728 = vmatprep.subr.msk.bf16.mxu1 %vm271_vm0, %v205_v0  ;;  %2727 = vmatprep.subr.msk.bf16.mxu0 %vm271_vm0, %v205_v0  ;;  %v273_v1 = vsel %vm271_vm0, %v205_v0, 0  ;;  %v2356_v3 = vld [vmem:[%s3719_s1 + $0x4] sm:$0x3]  ;;  %s2479_s20 = sshll.u32 %s2911_s15, 6  ;;  %vm246_vm1 = vcmask 31744   ;;  %v391_v10 = vsel %vm271_vm0, %v2347_v2, 0 }
  0x18   : > { %2726 = vmatpush3.bf16.msra.mxu1 %v273_v1  ;;  %2564 = vmatpush3.bf16.msra.mxu0 %v273_v1  ;;  %s179_s10 = scalar_select %p178_p12, %s2915_s16, 1  ;;  %v607_v7 = vsel %vm271_vm0, %v2356_v3, 0  ;;  %v2383_v8 = vld [vmem:[%s3719_s1 + $0x6] sm:$0x3]  ;;  %v2400_v11 = vld [vmem:[%s3719_s1 + $0x8] sm:$0x3] }
  0x19   : > { %2729 = vmatprep.subr.msk.bf16.mxu1 %vm271_vm0, %v2347_v2  ;;  %2730 = vmatprep.subr.msk.bf16.mxu0 %vm271_vm0, %v2356_v3  ;;  %v907_v16 = vsel %vm271_vm0, %v2383_v8, 0  ;;  %v2409_v17 = vld [vmem:[%s3719_s1 + $0xa] sm:$0x3]  ;;  %v1057_v18 = vsel %vm271_vm0, %v2400_v11, 0  ;;  %v2436_v19 = vld [vmem:[%s3719_s1 + $0xc] sm:$0x3] }
  0x1a   : > { %s2737_s11 = smul.u32 288, %s179_s10  ;;  %v1272_v23 = vsel %vm271_vm0, %v2409_v17, 0  ;;  %v1571_v24 = vsel %vm271_vm0, %v2436_v19, 0  ;;  %v2453_v25 = vld [vmem:[%s3719_s1 + $0xe] sm:$0x3]  ;;  %vm722_vm2 = vcmask 1045504  }
  0x1b   : > { %v2462_v26 = vld [vmem:[%s3719_s1 + $0x10] sm:$0x3]  ;;  %v1721_v35 = vsel %vm271_vm0, %v2453_v25, 0  ;;  %vm506_vm3 = vcmask 1046528   ;;  %s2473_s6 = sshll.u32 %s2911_s15, 4  ;;  %s2474_s7 = sshll.u32 %s2915_s16, 6 }
  0x1c   : > { %s182_s27 = scalar_lea.vmem %s3718_s0, %s2737_s11  ;;  %v1936_v36 = vsel %vm271_vm0, %v2462_v26, 0  ;;  %s2232_s15 = sadd.s32 %s2474_s7, %s2473_s6 }
  0x1d   : > { %s3043_s28 = scalar_lea.vmem %s182_s27, %s2479_s20  ;;  %s175_s27 = sand.u32 1, %s2903_s13  }
  0x1e   : > { %v2811_v4 = vld [vmem:[%s3043_s28] sm:$0xff]   ;;  %v2813_v6 = vld [vmem:[%s3043_s28 + $0x8] sm:$0xff]   ;;  %v2815_v12 = vld [vmem:[%s3043_s28 + $0x10] sm:$0xff]   ;;  %s3553_s4 = sshll.u32 %s175_s27, 7  ;;  %s2475_s16 = sshll.u32 %s2232_s15, 7 }
  0x1f   : > { %v2812_v5 = vld [vmem:[%s3043_s28 + $0x20] sm:$0xff]   ;;  %2565 = vmatprep.mubr.msk.bf16.mxu0 %vm246_vm1, %v2811_v4  ;;  %v2814_v9 = vld [vmem:[%s3043_s28 + $0x28] sm:$0xff]   ;;  %v2816_v13 = vld [vmem:[%s3043_s28 + $0x30] sm:$0xff]   ;;  %s3576_s5 = scalar_lea.vmem [#allocation2], %s3553_s4  ;;  %s3659_s11 = scalar_lea.hbm %s3721_s3, %s2475_s16 }
  0x20   : > { %2573 = vmatprep.mubr.msk.bf16.mxu1 %vm246_vm1, %v2812_v5  ;;  %2566 = vmatmul.mubr.msk.bf16.vlgmr.msra.gmra.mxu0 %vm246_vm1, %v2813_v6  ;;  %v2817_v14 = vld [vmem:[%s3043_s28 + $0x18] sm:$0xff]   ;;  %v2819_v20 = vld [vmem:[%s3043_s28 + $0x10] sm:$0xff]   ;;  %v2821_v22 = vld [vmem:[%s3043_s28 + $0x20] sm:$0xff]   ;;  %s2235_s8 = sshll.u32 %s3576_s5, 4  ;;  %s3667_s20 = scalar_lea.sflag [#allocation3], %s175_s27  ;;  %s3661_s8 = int_to_ptr.vmem [resolvable:$true] %s2235_s8 }
  0x21   : > { %2574 = vmatmul.mubr.msk.bf16.vlgmr.msra.gmra.mxu1 %vm246_vm1, %v2814_v9  ;;  %2600 = vmatpush3.bf16.msra.mxu0 %v607_v7  ;;  %v2818_v15 = vld [vmem:[%s3043_s28 + $0x38] sm:$0xff]   ;;  %v2822_v27 = vld [vmem:[%s3043_s28 + $0x28] sm:$0xff]   ;;  %v2823_v28 = vld [vmem:[%s3043_s28 + $0x30] sm:$0xff]   ;;  %s2835_s21 = scalar_lea.vmem %s3661_s8, 2048  ;;  %s2929_s24 = smov [#allocation2]  }
  0x22   : > { %2582 = vmatpush3.bf16.msra.mxu1 %v391_v10  ;;  %2569 = vmatprep.mubr.msk.bf16.mxu0 %vm246_vm1, %v2815_v12  ;;  %v2820_v21 = vld [vmem:[%s3043_s28 + $0x18] sm:$0xff]   ;;  %v2825_v30 = vld [vmem:[%s3043_s28 + $0x40] sm:$0xff]   ;;  %v2826_v31 = vld [vmem:[%s3043_s28 + $0x48] sm:$0xff]   ;;  %p2836_p13 = scmp.ne.s32.totalorder %s3661_s8, %s2835_s21 }
  0x23   : > { %2577 = vmatprep.mubr.msk.bf16.mxu1 %vm246_vm1, %v2816_v13  ;;  %2731 = vmatprep.subr.msk.bf16.mxu1 %vm271_vm0, %v2383_v8  ;;  %v2824_v29 = vld [vmem:[%s3043_s28 + $0x38] sm:$0xff]   ;;  %v2827_v32 = vld [vmem:[%s3043_s28 + $0x20] sm:$0xff]   ;;  %v2828_v33 = vld [vmem:[%s3043_s28 + $0x28] sm:$0xff]  }
  0x24   : > { %2732 = vmatprep.subr.msk.bf16.mxu0 %vm271_vm0, %v2400_v11  ;;  %v2829_v34 = vld [vmem:[%s3043_s28 + $0x30] sm:$0xff]   ;;  %v2830_v37 = vld [vmem:[%s3043_s28 + $0x38] sm:$0xff]   ;;  %v2831_v38 = vld [vmem:[%s3043_s28 + $0x40] sm:$0xff]   ;;  %p2837_p0 = pnand %p2836_p13, %p3003_p3 }
  0x25   : > { %v2832_v39 = vld [vmem:[%s3043_s28 + $0x48] sm:$0xff]   ;;  %v2833_v40 = vld [vmem:[%s3043_s28 + $0x50] sm:$0xff]   ;;  %v2834_v41 = vld [vmem:[%s3043_s28 + $0x58] sm:$0xff]   ;;  %s2839_s28 = sshll.u32 %s2929_s24, 4  ;;  %s2840_s28 = int_to_ptr.vmem [resolvable:$false] %s2839_s28 }
  0x26   : > { %p2838_p1 = pneg %p2837_p0  ;;  %s2841_s29 = scalar_lea.vmem %s2840_s28, 4096 }
  0x27   : > { %p2842_p2 = scmp.lt.s32.totalorder %s3661_s8, %s2840_s28  ;;  %p2843_p4 = scmp.lt.s32.totalorder %s2841_s29, %s2835_s21 }
  0x28   : > { %2570 = vmatmul.mubr.msk.bf16.gmra.mxu0 %vm246_vm1, %v2817_v14 }
  0x29   : > { %2578 = vmatmul.mubr.msk.bf16.gmra.mxu1 %vm246_vm1, %v2818_v15  ;;  %2601 = vmatprep.mubr.msk.bf16.mxu0 %vm246_vm1, %v2811_v4  ;;  %p2844_p5 = por %p2843_p4, %p2842_p2 }
  0x2a   : > { %2583 = vmatprep.mubr.msk.bf16.mxu1 %vm246_vm1, %v2811_v4 }
  0x2b   : > { %p2845_p6 = pnand %p2844_p5, %p2838_p1 }
  0x30   : > { %2602 = vmatmul.mubr.msk.bf16.vlgmr.msra.gmra.mxu0 %vm246_vm1, %v2813_v6 }
  0x31   : > { %2584 = vmatmul.mubr.msk.bf16.vlgmr.msra.gmra.mxu1 %vm246_vm1, %v2813_v6  ;;  %2605 = vmatprep.mubr.msk.bf16.mxu0 %vm246_vm1, %v2815_v12 }
  0x32   : > { %2618 = vmatpush3.bf16.msra.mxu1 %v907_v16  ;;  %2587 = vmatprep.mubr.msk.bf16.mxu1 %vm246_vm1, %v2815_v12 }
  0x33   : > { %2636 = vmatpush3.bf16.msra.mxu0 %v1057_v18  ;;  %2733 = vmatprep.subr.msk.bf16.mxu1 %vm271_vm0, %v2409_v17 }
  0x34   : > { %2734 = vmatprep.subr.msk.bf16.mxu0 %vm271_vm0, %v2436_v19 }
  0x38   : > { %2606 = vmatmul.mubr.msk.bf16.gmra.mxu0 %vm246_vm1, %v2817_v14 }
  0x39   : > { %2588 = vmatmul.mubr.msk.bf16.gmra.mxu1 %vm246_vm1, %v2817_v14  ;;  %2609 = vmatprep.mubr.msk.bf16.mxu0 %vm246_vm1, %v2812_v5 }
  0x3a   : > { %2591 = vmatprep.mubr.msk.bf16.mxu1 %vm246_vm1, %v2812_v5 }
  0x40   : > { %2610 = vmatmul.mubr.msk.bf16.gmra.mxu0 %vm246_vm1, %v2814_v9 }
  0x41   : > { %2592 = vmatmul.mubr.msk.bf16.gmra.mxu1 %vm246_vm1, %v2814_v9  ;;  %2613 = vmatprep.mubr.msk.bf16.mxu0 %vm246_vm1, %v2816_v13 }
  0x42   : > { %2595 = vmatprep.mubr.msk.bf16.mxu1 %vm246_vm1, %v2816_v13 }
  0x48   : > { %2614 = vmatmul.mubr.msk.bf16.gmra.mxu0 %vm246_vm1, %v2818_v15 }
  0x49   : > { %2596 = vmatmul.mubr.msk.bf16.gmra.mxu1 %vm246_vm1, %v2818_v15  ;;  %2637 = vmatprep.mubr.msk.bf16.mxu0 %vm246_vm1, %v2819_v20 }
  0x4a   : > { %2619 = vmatprep.mubr.msk.bf16.mxu1 %vm246_vm1, %v2819_v20 }
  0x50   : > { %2638 = vmatmul.mubr.msk.bf16.vlgmr.msra.gmra.mxu0 %vm246_vm1, %v2820_v21 }
  0x51   : > { %2620 = vmatmul.mubr.msk.bf16.vlgmr.msra.gmra.mxu1 %vm246_vm1, %v2820_v21  ;;  %2641 = vmatprep.mubr.msk.bf16.mxu0 %vm246_vm1, %v2821_v22 }
  0x52   : > { %2654 = vmatpush3.bf16.msra.mxu1 %v1272_v23  ;;  %2623 = vmatprep.mubr.msk.bf16.mxu1 %vm246_vm1, %v2821_v22 }
  0x53   : > { %2672 = vmatpush3.bf16.msra.mxu0 %v1571_v24  ;;  %2735 = vmatprep.subr.msk.bf16.mxu1 %vm271_vm0, %v2453_v25 }
  0x54   : > { %2736 = vmatprep.subr.msk.bf16.mxu0 %vm271_vm0, %v2462_v26 }
  0x58   : > { %2642 = vmatmul.mubr.msk.bf16.gmra.mxu0 %vm246_vm1, %v2822_v27 }
  0x59   : > { %2624 = vmatmul.mubr.msk.bf16.gmra.mxu1 %vm246_vm1, %v2822_v27  ;;  %2645 = vmatprep.mubr.msk.bf16.mxu0 %vm246_vm1, %v2823_v28 }
  0x5a   : > { %2627 = vmatprep.mubr.msk.bf16.mxu1 %vm246_vm1, %v2823_v28 }
  0x60   : > { %2646 = vmatmul.mubr.msk.bf16.gmra.mxu0 %vm246_vm1, %v2824_v29 }
  0x61   : > { %2628 = vmatmul.mubr.msk.bf16.gmra.mxu1 %vm246_vm1, %v2824_v29  ;;  %2649 = vmatprep.mubr.msk.bf16.mxu0 %vm246_vm1, %v2825_v30 }
  0x62   : > { %2631 = vmatprep.mubr.msk.bf16.mxu1 %vm246_vm1, %v2825_v30 }
  0x68   : > { %2650 = vmatmul.mubr.msk.bf16.gmra.mxu0 %vm246_vm1, %v2826_v31 }
  0x69   : > { %2632 = vmatmul.mubr.msk.bf16.gmra.mxu1 %vm246_vm1, %v2826_v31  ;;  %2673 = vmatprep.mubr.msk.bf16.mxu0 %vm246_vm1, %v2827_v32 }
  0x6a   : > { %2655 = vmatprep.mubr.msk.bf16.mxu1 %vm246_vm1, %v2819_v20 }
  0x70   : > { %2674 = vmatmul.mubr.msk.bf16.vlgmr.msra.gmra.mxu0 %vm246_vm1, %v2828_v33 }
  0x71   : > { %2656 = vmatmul.mubr.msk.bf16.vlgmr.msra.gmra.mxu1 %vm246_vm1, %v2820_v21  ;;  %2677 = vmatprep.mubr.msk.bf16.mxu0 %vm246_vm1, %v2829_v34 }
  0x72   : > { %2690 = vmatpush3.bf16.msra.mxu1 %v1721_v35  ;;  %2659 = vmatprep.mubr.msk.bf16.mxu1 %vm246_vm1, %v2821_v22 }
  0x73   : > { %2708 = vmatpush3.bf16.msra.mxu0 %v1936_v36 }
  0x78   : > { %2678 = vmatmul.mubr.msk.bf16.gmra.mxu0 %vm246_vm1, %v2830_v37 }
  0x79   : > { %2660 = vmatmul.mubr.msk.bf16.gmra.mxu1 %vm246_vm1, %v2822_v27  ;;  %2681 = vmatprep.mubr.msk.bf16.mxu0 %vm246_vm1, %v2831_v38 }
  0x7a   : > { %2663 = vmatprep.mubr.msk.bf16.mxu1 %vm246_vm1, %v2823_v28 }
  0x80   : > { %2682 = vmatmul.mubr.msk.bf16.gmra.mxu0 %vm246_vm1, %v2832_v39 }
  0x81   : > { %2664 = vmatmul.mubr.msk.bf16.gmra.mxu1 %vm246_vm1, %v2824_v29  ;;  %2685 = vmatprep.mubr.msk.bf16.mxu0 %vm246_vm1, %v2833_v40 }
  0x82   : > { %2667 = vmatprep.mubr.msk.bf16.mxu1 %vm246_vm1, %v2825_v30 }
  0x88   : > { %2686 = vmatmul.mubr.msk.bf16.gmra.mxu0 %vm246_vm1, %v2834_v41 }
  0x89   : > { %2668 = vmatmul.mubr.msk.bf16.gmra.mxu1 %vm246_vm1, %v2826_v31  ;;  %2709 = vmatprep.mubr.msk.bf16.mxu0 %vm246_vm1, %v2827_v32 }
  0x8a   : > { %2691 = vmatprep.mubr.msk.bf16.mxu1 %vm246_vm1, %v2827_v32 }
  0x90   : > { %2710 = vmatmul.mubr.msk.bf16.vlgmr.msra.gmra.mxu0 %vm246_vm1, %v2828_v33 }
  0x91   : > { %2692 = vmatmul.mubr.msk.bf16.vlgmr.msra.gmra.mxu1 %vm246_vm1, %v2828_v33  ;;  %2713 = vmatprep.mubr.msk.bf16.mxu0 %vm246_vm1, %v2829_v34 }
  0x92   : > { %2695 = vmatprep.mubr.msk.bf16.mxu1 %vm246_vm1, %v2829_v34 }
  0x98   : > { %2714 = vmatmul.mubr.msk.bf16.gmra.mxu0 %vm246_vm1, %v2830_v37 }
  0x99   : > { %2696 = vmatmul.mubr.msk.bf16.gmra.mxu1 %vm246_vm1, %v2830_v37  ;;  %2717 = vmatprep.mubr.msk.bf16.mxu0 %vm246_vm1, %v2831_v38 }
  0x9a   : > { %2699 = vmatprep.mubr.msk.bf16.mxu1 %vm246_vm1, %v2831_v38 }
  0xa0   : > { %2718 = vmatmul.mubr.msk.bf16.gmra.mxu0 %vm246_vm1, %v2832_v39 }
  0xa1   : > { %2700 = vmatmul.mubr.msk.bf16.gmra.mxu1 %vm246_vm1, %v2832_v39  ;;  %2721 = vmatprep.mubr.msk.bf16.mxu0 %vm246_vm1, %v2833_v40 }
  0xa2   : > { %2703 = vmatprep.mubr.msk.bf16.mxu1 %vm246_vm1, %v2833_v40 }
  0xa8   : > { %2722 = vmatmul.mubr.msk.bf16.gmra.mxu0 %vm246_vm1, %v2834_v41 }
  0xa9   : > { %2704 = vmatmul.mubr.msk.bf16.gmra.mxu1 %vm246_vm1, %v2834_v41 }
  0xe0   : > { %v2567_v42 = vpop.f32.mrf.mxu0 }
  0xe1   : > { %v3173_v43 = vpop.f32.mrf.mxu1 }
  0xe2   : > { %v309_v44 = vpop.f32.mrf.mxu0 }
  0xe3   : > { %v3175_v45 = vpop.f32.mrf.mxu1 }
  0xe4   : > { %v2568_v46 = vpop.f32.mrf.mxu0 }
  0xe5   : > { %v3177_v47 = vpop.f32.mrf.mxu1 }
  0xe6   : > { %v312_v48 = vpop.f32.mrf.mxu0 }
  0xe7   : > { %v3179_v49 = vpop.f32.mrf.mxu1 }
  0xe8   : > { %v2571_v50 = vpop.f32.mrf.mxu0 }
  0xe9   : > { %v3181_v51 = vpop.f32.mrf.mxu1 }
  0xea   : > { %v3183_v52 = vpop.f32.mrf.mxu0 }
  0xeb   : > { %v3185_v53 = vpop.f32.mrf.mxu1 }
  0xec   : > { %v3187_v54 = vpop.f32.mrf.mxu0 }
  0xed   : > { %v3189_v55 = vpop.f32.mrf.mxu1 }
  0xee   : > { %v3191_v56 = vpop.f32.mrf.mxu0 }
  0xef   : > { %v3193_v57 = vpop.f32.mrf.mxu1 }
  0xf0   : > { %v2603_v58 = vpop.f32.mrf.mxu0 }
  0xf1   : > { %v2585_v59 = vpop.f32.mrf.mxu1  ;;  %v726_v63 = vrot.slane %v2603_v58, 2 }
  0xf2   : > { %v3195_v60 = vpop.f32.mrf.mxu0  ;;  %v510_v2 = vrot.slane %v2585_v59, 1 }
  0xf3   : > { %v3197_v61 = vpop.f32.mrf.mxu1  ;;  %v723_v5 = vrot.slane %v3195_v60, 2 }
  0xf4   : > { %v2604_v62 = vpop.f32.mrf.mxu0  ;;  %v507_v9 = vrot.slane %v3197_v61, 1 }
  0xf5   : > { %v2586_v0 = vpop.f32.mrf.mxu1  ;;  %v728_v1 = vrot.slane %v2604_v62, 2 }
  0xf6   : > { %v512_v3 = vrot.slane %v2586_v0, 1  ;;  %v646_v4 = vpop.f32.mrf.mxu0 }
  0xf7   : > { %v729_v6 = vsel %vm722_vm2, %v726_v63, %v728_v1  ;;  %v430_v7 = vpop.f32.mrf.mxu1  ;;  %v724_v8 = vrot.slane %v646_v4, 2 }
  0xf8   : > { %v513_v10 = vsel %vm506_vm3, %v510_v2, %v512_v3  ;;  %v508_v11 = vrot.slane %v430_v7, 1  ;;  %v2607_v12 = vpop.f32.mrf.mxu0 }
  0xf9   : > { %v574_v13 = vadd.f32 %v2567_v42, %v513_v10  ;;  %v725_v14 = vsel %vm722_vm2, %v723_v5, %v724_v8  ;;  %v727_v15 = vsel %vm722_vm2, %v724_v8, %v726_v63  ;;  %v2589_v16 = vpop.f32.mrf.mxu1  ;;  %v734_v25 = vrot.slane %v2607_v12, 2 }
  0xfa   : > { %v509_v17 = vsel %vm506_vm3, %v507_v9, %v508_v11  ;;  %v511_v18 = vsel %vm506_vm3, %v508_v11, %v510_v2  ;;  %v659_v19 = vpop.f32.mrf.mxu0  ;;  %v518_v33 = vrot.slane %v2589_v16, 1 }
  0xfb   : > { %v3211_v20 = vadd.f32 %v729_v6, %v574_v13  ;;  %v572_v21 = vadd.f32 %v509_v17, %v309_v44  ;;  %v573_v22 = vadd.f32 %v511_v18, %v312_v48  ;;  %v443_v23 = vpop.f32.mrf.mxu1  ;;  %v730_v24 = vrot.slane %v659_v19, 2 }
  0xfc   : > { %v514_v26 = vrot.slane %v443_v23, 1  ;;  %v2608_v27 = vpop.f32.mrf.mxu0 }
  0xfd   : > { %v3213_v28 = vadd.f32 %v725_v14, %v572_v21  ;;  %v3215_v29 = vadd.f32 %v727_v15, %v573_v22  ;;  %v731_v30 = vsel %vm722_vm2, %v728_v1, %v730_v24  ;;  %v2590_v31 = vpop.f32.mrf.mxu1  ;;  %v736_v32 = vrot.slane %v2608_v27, 2 }
  0xfe   : > { %v515_v34 = vsel %vm506_vm3, %v512_v3, %v514_v26  ;;  %v520_v35 = vrot.slane %v2590_v31, 1  ;;  %v662_v36 = vpop.f32.mrf.mxu0 }
  0xff   : > { %v575_v37 = vadd.f32 %v2568_v46, %v515_v34  ;;  %v737_v38 = vsel %vm722_vm2, %v734_v25, %v736_v32  ;;  %v446_v39 = vpop.f32.mrf.mxu1  ;;  %v732_v40 = vrot.slane %v662_v36, 2 }
 0x100   : > { %v521_v41 = vsel %vm506_vm3, %v518_v33, %v520_v35  ;;  %v516_v42 = vrot.slane %v446_v39, 1  ;;  %v2611_v44 = vpop.f32.mrf.mxu0 }
 0x101   : > { %v3221_v48 = vadd.f32 %v731_v30, %v575_v37  ;;  %v578_v58 = vadd.f32 %v2571_v50, %v521_v41  ;;  %v733_v59 = vsel %vm722_vm2, %v730_v24, %v732_v40  ;;  %v735_v62 = vsel %vm722_vm2, %v732_v40, %v734_v25  ;;  %v2593_v63 = vpop.f32.mrf.mxu1 }
 0x102   : > { %v517_v0 = vsel %vm506_vm3, %v514_v26, %v516_v42  ;;  %v519_v46 = vsel %vm506_vm3, %v516_v42, %v518_v33  ;;  %v675_v1 = vpop.f32.mrf.mxu0  ;;  %v742_v8 = vrot.slane %v2611_v44, 2  ;;  %v526_v16 = vrot.slane %v2593_v63, 1 }
 0x103   : > { %v3227_v2 = vadd.f32 %v737_v38, %v578_v58  ;;  %v576_v3 = vadd.f32 %v517_v0, %v3183_v52  ;;  %v577_v4 = vadd.f32 %v519_v46, %v3191_v56  ;;  %v459_v6 = vpop.f32.mrf.mxu1  ;;  %v738_v7 = vrot.slane %v675_v1, 2 }
 0x104   : > { %v522_v50 = vrot.slane %v459_v6, 1  ;;  %v2612_v10 = vpop.f32.mrf.mxu0 }
 0x105   : > { %v3231_v11 = vadd.f32 %v733_v59, %v576_v3  ;;  %v3233_v12 = vadd.f32 %v735_v62, %v577_v4  ;;  %v739_v13 = vsel %vm722_vm2, %v736_v32, %v738_v7  ;;  %v2594_v14 = vpop.f32.mrf.mxu1  ;;  %v744_v15 = vrot.slane %v2612_v10, 2 }
 0x106   : > { %v523_v17 = vsel %vm506_vm3, %v520_v35, %v522_v50  ;;  %v528_v18 = vrot.slane %v2594_v14, 1  ;;  %v678_v52 = vpop.f32.mrf.mxu0 }
 0x107   : > { %v579_v56 = vadd.f32 %v3187_v54, %v523_v17  ;;  %v745_v19 = vsel %vm722_vm2, %v742_v8, %v744_v15  ;;  %v462_v21 = vpop.f32.mrf.mxu1  ;;  %v740_v22 = vrot.slane %v678_v52, 2 }
 0x108   : > { %v529_v23 = vsel %vm506_vm3, %v526_v16, %v528_v18  ;;  %v524_v24 = vrot.slane %v462_v21, 1  ;;  %v2615_v25 = vpop.f32.mrf.mxu0 }
 0x109   : > { %v795_v26 = vadd.f32 %v739_v13, %v579_v56  ;;  %v582_v27 = vadd.f32 %v3173_v43, %v529_v23  ;;  %v741_v30 = vsel %vm722_vm2, %v738_v7, %v740_v22  ;;  %v743_v31 = vsel %vm722_vm2, %v740_v22, %v742_v8  ;;  %v2597_v32 = vpop.f32.mrf.mxu1 }
 0x10a   : > { %v525_v33 = vsel %vm506_vm3, %v522_v50, %v524_v24  ;;  %v527_v54 = vsel %vm506_vm3, %v524_v24, %v526_v16  ;;  %v691_v34 = vpop.f32.mrf.mxu0  ;;  %v750_v40 = vrot.slane %v2615_v25, 2  ;;  %v534_v63 = vrot.slane %v2597_v32, 1 }
 0x10b   : > { %v3245_v35 = vadd.f32 %v745_v19, %v582_v27  ;;  %v580_v36 = vadd.f32 %v525_v33, %v3175_v45  ;;  %v581_v37 = vadd.f32 %v527_v54, %v3179_v49  ;;  %v475_v38 = vpop.f32.mrf.mxu1  ;;  %v746_v39 = vrot.slane %v691_v34, 2 }
 0x10c   : > { %v530_v43 = vrot.slane %v475_v38, 1  ;;  %v2616_v41 = vpop.f32.mrf.mxu0 }
 0x10d   : > { %v3249_v42 = vadd.f32 %v741_v30, %v580_v36  ;;  %v3251_v44 = vadd.f32 %v743_v31, %v581_v37  ;;  %v747_v58 = vsel %vm722_vm2, %v744_v15, %v746_v39  ;;  %v2598_v59 = vpop.f32.mrf.mxu1  ;;  %v752_v62 = vrot.slane %v2616_v41, 2 }
 0x10e   : > { %v531_v0 = vsel %vm506_vm3, %v528_v18, %v530_v43  ;;  %v536_v46 = vrot.slane %v2598_v59, 1  ;;  %v694_v45 = vpop.f32.mrf.mxu0 }
 0x10f   : > { %v583_v49 = vadd.f32 %v3177_v47, %v531_v0  ;;  %v753_v1 = vsel %vm722_vm2, %v750_v40, %v752_v62  ;;  %v771_v3 = vsel %vm722_vm2, %v752_v62, %v723_v5  ;;  %v478_v4 = vpop.f32.mrf.mxu1  ;;  %v748_v6 = vrot.slane %v694_v45, 2 }
 0x110   : > { %v537_v7 = vsel %vm506_vm3, %v534_v63, %v536_v46  ;;  %v555_v8 = vsel %vm506_vm3, %v536_v46, %v507_v9  ;;  %v532_v50 = vrot.slane %v478_v4, 1  ;;  %v3264_v10 = vpop.f32.mrf.mxu0 }
 0x111   : > { %v799_v13 = vadd.f32 %v747_v58, %v583_v49  ;;  %v586_v47 = vadd.f32 %v3181_v51, %v537_v7  ;;  %v587_v14 = vadd.f32 %v3189_v55, %v555_v8  ;;  %v749_v60 = vsel %vm722_vm2, %v746_v39, %v748_v6  ;;  %v2621_v15 = vpop.f32.mrf.mxu1 }
 0x112   : > { %v533_v5 = vsel %vm506_vm3, %v530_v43, %v532_v50  ;;  %v535_v16 = vsel %vm506_vm3, %v532_v50, %v534_v63  ;;  %v751_v17 = vsel %vm722_vm2, %v748_v6, %v750_v40  ;;  %v3272_v61 = vpop.f32.mrf.mxu0 }
 0x113   : > { %v3274_v9 = vadd.f32 %v753_v1, %v586_v47  ;;  %v3276_v18 = vadd.f32 %v771_v3, %v587_v14  ;;  %v584_v52 = vadd.f32 %v533_v5, %v3185_v53  ;;  %v585_v51 = vadd.f32 %v535_v16, %v3193_v57  ;;  %v943_v55 = vpop.f32.mrf.mxu1 }
 0x114   : > { %v3280_v56 = vpop.f32.mrf.mxu0  ;;  %v3722_v16 = vrot.slane %v3272_v61, 1 }
 0x115   : > { %v800_v19 = vadd.f32 %v749_v60, %v584_v52  ;;  %v3282_v21 = vadd.f32 %v751_v17, %v585_v51  ;;  %v2622_v22 = vpop.f32.mrf.mxu1  ;;  %v1177_v50 = vrot.slane %v3280_v56, 1  ;;  %v1175_v60 = vrot.slane %v3264_v10, 1 }
 0x116   : > { %v3285_v23 = vadd.f32 %v2622_v22, %v3221_v48  ;;  %v1096_v24 = vpop.f32.mrf.mxu0  ;;  %v1024_v56 = vadd.f32 %v2621_v15, %v3211_v20 }
 0x117   : > { %v946_v25 = vpop.f32.mrf.mxu1  ;;  %v1173_v47 = vrot.slane %v1096_v24, 1  ;;  %v1178_v52 = vsel %vm506_vm3, %v1175_v60, %v1177_v50 }
 0x118   : > { %v3287_v27 = vpop.f32.mrf.mxu0 }
 0x119   : > { %v3289_v30 = vpop.f32.mrf.mxu1  ;;  %v1174_v22 = vsel %vm506_vm3, %v3722_v16, %v1173_v47  ;;  %v1176_v15 = vsel %vm506_vm3, %v1173_v47, %v1175_v60 }
 0x11a   : > { %v1109_v31 = vpop.f32.mrf.mxu0  ;;  %v1028_v47 = vadd.f32 %v3289_v30, %v3227_v2 }
 0x11b   : > { %v959_v53 = vpop.f32.mrf.mxu1  ;;  %v1179_v51 = vrot.slane %v1109_v31, 1  ;;  %v1023_v31 = vadd.f32 %v946_v25, %v3215_v29 }
 0x11c   : > { %v3291_v32 = vpop.f32.mrf.mxu0  ;;  %v1026_v60 = vadd.f32 %v959_v53, %v3231_v11 }
 0x11d   : > { %v2626_v57 = vpop.f32.mrf.mxu1  ;;  %v1185_v24 = vrot.slane %v3291_v32, 1  ;;  %v1180_v32 = vsel %vm506_vm3, %v1177_v50, %v1179_v51 }
 0x11e   : > { %v3293_v33 = vadd.f32 %v2626_v57, %v795_v26  ;;  %v1112_v54 = vpop.f32.mrf.mxu0  ;;  %v3395_v2 = vadd.f32 %v1180_v32, %v3285_v23 }
 0x11f   : > { %v962_v34 = vpop.f32.mrf.mxu1  ;;  %v1181_v10 = vrot.slane %v1112_v54, 1 }
 0x120   : > { %v3295_v36 = vpop.f32.mrf.mxu0 }
 0x121   : > { %v3297_v37 = vpop.f32.mrf.mxu1  ;;  %v1182_v29 = vsel %vm506_vm3, %v1179_v51, %v1181_v10 }
 0x122   : > { %v3299_v48 = vpop.f32.mrf.mxu0  ;;  %v3399_v30 = vadd.f32 %v1182_v29, %v1026_v60  ;;  %v1032_v23 = vadd.f32 %v3297_v37, %v3245_v35 }
 0x123   : > { %v3301_v38 = vpop.f32.mrf.mxu1  ;;  %v1187_v54 = vrot.slane %v3299_v48, 1 }
 0x124   : > { %v3303_v39 = vpop.f32.mrf.mxu0 }
 0x125   : > { %v2630_v40 = vpop.f32.mrf.mxu1  ;;  %v1193_v25 = vrot.slane %v3303_v39, 1  ;;  %v1188_v53 = vsel %vm506_vm3, %v1185_v24, %v1187_v54 }
 0x126   : > { %v3305_v43 = vadd.f32 %v2630_v40, %v799_v13  ;;  %v3307_v41 = vpop.f32.mrf.mxu0  ;;  %v1022_v40 = vadd.f32 %v943_v55, %v3213_v28  ;;  %v1027_v55 = vadd.f32 %v962_v34, %v3233_v12  ;;  %v1191_v12 = vrot.slane %v3295_v36, 1 }
 0x127   : > { %v3309_v58 = vpop.f32.mrf.mxu1  ;;  %v1189_v48 = vrot.slane %v3307_v41, 1 }
 0x128   : > { %v3311_v26 = vpop.f32.mrf.mxu0  ;;  %v3368_v16 = vadd.f32 %v1174_v22, %v1022_v40  ;;  %v1194_v36 = vsel %vm506_vm3, %v1191_v12, %v1193_v25 }
 0x129   : > { %v3313_v59 = vpop.f32.mrf.mxu1  ;;  %v1192_v40 = vsel %vm506_vm3, %v1189_v48, %v1191_v12  ;;  %v1247_v35 = vadd.f32 %v1194_v36, %v1032_v23 }
 0x12a   : > { %v3315_v62 = vpop.f32.mrf.mxu0 }
 0x12b   : > { %v991_v63 = vpop.f32.mrf.mxu1  ;;  %v1195_v34 = vrot.slane %v3315_v62, 1  ;;  %v1031_v62 = vadd.f32 %v3309_v58, %v3251_v44 }
 0x12c   : > { %v3317_v0 = vadd.f32 %v991_v63, %v800_v19  ;;  %v3319_v46 = vpop.f32.mrf.mxu0 }
 0x12d   : > { %v3321_v45 = vpop.f32.mrf.mxu1  ;;  %v1201_v39 = vrot.slane %v3319_v46, 1  ;;  %v1199_v46 = vrot.slane %v3311_v26, 1  ;;  %v1196_v44 = vsel %vm506_vm3, %v1193_v25, %v1195_v34 }
 0x12e   : > { %v3323_v49 = vpop.f32.mrf.mxu0  ;;  %v1037_v37 = vadd.f32 %v3321_v45, %v3276_v18 }
 0x12f   : > { %v3325_v1 = vpop.f32.mrf.mxu1  ;;  %v1202_v58 = vsel %vm506_vm3, %v1199_v46, %v1201_v39  ;;  %v1197_v26 = vrot.slane %v3323_v49, 1 }
 0x130   : > { %v3327_v3 = vpop.f32.mrf.mxu0 }
 0x131   : > { %v3329_v4 = vpop.f32.mrf.mxu1 }
 0x132   : > { %v3331_v6 = vpop.f32.mrf.mxu0  ;;  %v1390_v18 = vrot.slane %v3329_v4, 2 }
 0x133   : > { %v3333_v7 = vpop.f32.mrf.mxu1 }
 0x134   : > { %v3335_v8 = vpop.f32.mrf.mxu0  ;;  %v1387_v60 = vrot.slane %v3333_v7, 2 }
 0x135   : > { %3725 = vst [vmem:[#allocation5_spill] sm:$0xff] %v3335_v8  ;;  %v3338_v13 = vpop.f32.mrf.mxu1  ;;  %v1183_v8 = vrot.slane %v3287_v27, 1 }
 0x136   : > { %v3340_v14 = vpop.f32.mrf.mxu0 }
 0x137   : > { %v3343_v5 = vpop.f32.mrf.mxu1  ;;  %v1186_v28 = vsel %vm506_vm3, %v1183_v8, %v1185_v24  ;;  %v1184_v50 = vsel %vm506_vm3, %v1181_v10, %v1183_v8  ;;  %v1030_v10 = vadd.f32 %v3301_v38, %v3249_v42  ;;  %v1190_v24 = vsel %vm506_vm3, %v1187_v54, %v1189_v48 }
 0x138   : > { %v3346_v17 = vpop.f32.mrf.mxu0  ;;  %v3397_v11 = vadd.f32 %v1186_v28, %v1028_v47  ;;  %v3404_v8 = vadd.f32 %v1184_v50, %v1027_v55  ;;  %v1036_v42 = vadd.f32 %v3313_v59, %v3274_v9  ;;  %v1392_v38 = vrot.slane %v3338_v13, 2 }
 0x139   : > { %3726 = vst [vmem:[#allocation6_spill] sm:$0xff] %v3346_v17  ;;  %v3349_v19 = vpop.f32.mrf.mxu1  ;;  %v3361_v17 = vadd.f32 %v1178_v52, %v1024_v56  ;;  %v3387_v56 = vadd.f32 %v1176_v15, %v1023_v31  ;;  %v1244_v15 = vadd.f32 %v1188_v53, %v3293_v33  ;;  %v3431_v28 = vadd.f32 %v1190_v24, %v1030_v10 }
 0x13a   : > { %v3356_v57 = vpop.f32.mrf.mxu0  ;;  %v1246_v33 = vadd.f32 %v1192_v40, %v1031_v62  ;;  %v3728_v55 = vrot.slane %v3272_v61, 1  ;;  %v1388_v49 = vrot.slane %v3343_v5, 2  ;;  %v1248_v47 = vadd.f32 %v1196_v44, %v3305_v43 }
 0x13b   : > { %3727 = vst [vmem:[#allocation7_spill] sm:$0xff] %v3356_v57  ;;  %v3359_v63 = vpop.f32.mrf.mxu1  ;;  %v3440_v9 = vadd.f32 %v1202_v58, %v1036_v42  ;;  %v1198_v13 = vsel %vm506_vm3, %v1195_v34, %v1197_v26  ;;  %v1035_v43 = vadd.f32 %v3325_v1, %v3282_v21  ;;  %v1393_v12 = vsel %vm722_vm2, %v1390_v18, %v1392_v38 }
 0x13c   : > { %v3365_v20 = vpop.f32.mrf.mxu0  ;;  %v1220_v29 = vsel %vm506_vm3, %v1201_v39, %v3728_v55  ;;  %v1394_v59 = vrot.slane %v3359_v63, 2  ;;  %v1389_v34 = vsel %vm722_vm2, %v1387_v60, %v1388_v49  ;;  %v1398_v7 = vrot.slane %v3349_v19, 2 }
 0x13d   : > { %v3372_v57 = vpop.f32.mrf.mxu1  ;;  %v1252_v48 = vadd.f32 %v1220_v29, %v1037_v37  ;;  %v3462_v36 = vadd.f32 %v1198_v13, %v3317_v0  ;;  %v1391_v21 = vsel %vm722_vm2, %v1388_v49, %v1390_v18 }
 0x13e   : > { %v3378_v27 = vpop.f32.mrf.mxu0  ;;  %v1400_v61 = vrot.slane %v3372_v57, 2  ;;  %v1395_v1 = vsel %vm722_vm2, %v1392_v38, %v1394_v59 }
 0x13f   : > { %v3385_v52 = vpop.f32.mrf.mxu1  ;;  %v1455_v55 = vadd.f32 %v1395_v1, %v3395_v2 }
 0x140   : > { %v3392_v51 = vpop.f32.mrf.mxu0  ;;  %v1396_v50 = vrot.slane %v3385_v52, 2  ;;  %v1200_v52 = vsel %vm506_vm3, %v1197_v26, %v1199_v46  ;;  %v1401_v23 = vsel %vm722_vm2, %v1398_v7, %v1400_v61  ;;  %v1452_v46 = vadd.f32 %v1389_v34, %v3368_v16 }
 0x141   : > { %v3402_v41 = vpop.f32.mrf.mxu1  ;;  %v1453_v26 = vadd.f32 %v1391_v21, %v3387_v56 }
 0x142   : > { %v3410_v22 = vpop.f32.mrf.mxu0  ;;  %v1397_v10 = vsel %vm722_vm2, %v1394_v59, %v1396_v50  ;;  %v1406_v19 = vrot.slane %v3402_v41, 2  ;;  %v1399_v0 = vsel %vm722_vm2, %v1396_v50, %v1398_v7  ;;  %v1250_v41 = vadd.f32 %v1200_v52, %v1035_v43 }
 0x143   : > { %v3418_v31 = vpop.f32.mrf.mxu1  ;;  %v1456_v16 = vadd.f32 %v1397_v10, %v3399_v30  ;;  %v1457_v49 = vadd.f32 %v1399_v0, %v3404_v8  ;;  %v1687_v2 = vadd.f32 %v3340_v14, %v1453_v26  ;;  %v1686_v8 = vadd.f32 %v3331_v6, %v1452_v46 }
 0x144   : > { %v3424_v32 = vpop.f32.mrf.mxu0  ;;  %v1402_v4 = vrot.slane %v3418_v31, 2  ;;  %v1454_v31 = vadd.f32 %v1393_v12, %v3361_v17  ;;  %v1458_v17 = vadd.f32 %v1401_v23, %v3397_v11 }
 0x145   : > { %v2666_v54 = vpop.f32.mrf.mxu1  ;;  %v3501_v14 = vadd.f32 %v3378_v27, %v1457_v49 }
 0x146   : > { %v3437_v25 = vpop.f32.mrf.mxu0  ;;  %v1408_v39 = vrot.slane %v2666_v54, 2  ;;  %v1403_v44 = vsel %vm722_vm2, %v1400_v61, %v1402_v4  ;;  %v1688_v43 = vadd.f32 %v3327_v3, %v1454_v31 }
 0x147   : > { %v1343_v45 = vpop.f32.mrf.mxu1  ;;  %v1459_v18 = vadd.f32 %v1403_v44, %v1244_v15 }
 0x148   : > { %v3448_v5 = vpop.f32.mrf.mxu0  ;;  %v1404_v57 = vrot.slane %v1343_v45, 2  ;;  %v1409_v42 = vsel %vm722_vm2, %v1406_v19, %v1408_v39 }
 0x149   : > { %v3454_v63 = vpop.f32.mrf.mxu1  ;;  %v1462_v13 = vadd.f32 %v1409_v42, %v1247_v35  ;;  %v3729_v35 = vld [vmem:[#allocation5_spill] sm:$0xff] }
 0x14a   : > { %v3458_v53 = vpop.f32.mrf.mxu0  ;;  %v1407_v37 = vsel %vm722_vm2, %v1404_v57, %v1406_v19  ;;  %v1405_v56 = vsel %vm722_vm2, %v1402_v4, %v1404_v57  ;;  %v1414_v11 = vrot.slane %v3454_v63, 2  ;;  %v3731_v57 = vld [vmem:[#allocation7_spill] sm:$0xff] }
 0x14b   : > { %v1356_v62 = vpop.f32.mrf.mxu1  ;;  %v1461_v61 = vadd.f32 %v1407_v37, %v1246_v33  ;;  %v1460_v15 = vadd.f32 %v1405_v56, %v3431_v28  ;;  %v3495_v33 = vadd.f32 %v3729_v35, %v1455_v55  ;;  %v3507_v6 = vadd.f32 %v3731_v57, %v1456_v16 }
 0x14c   : > { %v1410_v24 = vrot.slane %v1356_v62, 2  ;;  %v2688_v40 = vpop.f32.mrf.mxu0  ;;  %v3510_v28 = vadd.f32 %v3365_v20, %v1459_v18  ;;  %v3517_v27 = vadd.f32 %v3392_v51, %v1462_v13 }
 0x14d   : > { %v2670_v58 = vpop.f32.mrf.mxu1 }
 0x14e   : > { %v1416_v38 = vrot.slane %v2670_v58, 2  ;;  %v3476_v54 = vpop.f32.mrf.mxu0  ;;  %v1411_v59 = vsel %vm722_vm2, %v1408_v39, %v1410_v24  ;;  %v3730_v39 = vld [vmem:[#allocation6_spill] sm:$0xff] }
 0x14f   : > { %v1359_v29 = vpop.f32.mrf.mxu1  ;;  %v1463_v4 = vadd.f32 %v1411_v59, %v1248_v47  ;;  %v3498_v3 = vadd.f32 %v3730_v39, %v1458_v17  ;;  %v3513_v47 = vadd.f32 %v3437_v25, %v1461_v61  ;;  %v3523_v25 = vadd.f32 %v3410_v22, %v1460_v15  ;;  %v3545_v17 = vld [vmem:[%s3720_s2] ss:$0 sm:$0xff] }
 0x150   : > { %v2711_v45 = vpop.f32.mrf.mxu0  ;;  %v1412_v50 = vrot.slane %v1359_v29, 2  ;;  %v1435_v30 = vsel %vm722_vm2, %v1416_v38, %v1387_v60  ;;  %v1417_v60 = vsel %vm722_vm2, %v1414_v11, %v1416_v38 }
 0x151   : > { %v2693_v12 = vpop.f32.mrf.mxu1  ;;  %v1467_v52 = vadd.f32 %v1435_v30, %v1252_v48  ;;  %v1466_v20 = vadd.f32 %v1417_v60, %v3440_v9  ;;  %v2054_v46 = vrot.slane %v2711_v45, 2  ;;  %v3526_v48 = vadd.f32 %v3424_v32, %v1463_v4 }
 0x152   : > { %v3488_v34 = vpop.f32.mrf.mxu0  ;;  %v1413_v21 = vsel %vm722_vm2, %v1410_v24, %v1412_v50  ;;  %v1415_v62 = vsel %vm722_vm2, %v1412_v50, %v1414_v11  ;;  %v1839_v23 = vrot.slane %v2693_v12, 1 }
 0x153   : > { %v3492_v7 = vpop.f32.mrf.mxu1  ;;  %v3533_v42 = vadd.f32 %v2688_v40, %v1467_v52  ;;  %v3536_v9 = vadd.f32 %v1413_v21, %v3462_v36  ;;  %v3538_v22 = vadd.f32 %v1415_v62, %v1250_v41  ;;  %v2051_v38 = vrot.slane %v3488_v34, 2 }
 0x154   : > { %v3504_v63 = vpop.f32.mrf.mxu0  ;;  %v1836_v51 = vrot.slane %v3492_v7, 1  ;;  %v3556_v56 = vadd.f32 %v3448_v5, %v1466_v20 }
 0x155   : > { %v2694_v1 = vpop.f32.mrf.mxu1  ;;  %v2056_v19 = vrot.slane %v3504_v63, 2 }
 0x156   : > { %v1841_v10 = vrot.slane %v2694_v1, 1  ;;  %v1975_v31 = vpop.f32.mrf.mxu0 }
 0x157   : > { %v1760_v0 = vpop.f32.mrf.mxu1  ;;  %v2052_v58 = vrot.slane %v1975_v31, 2  ;;  %v2057_v55 = vsel %vm722_vm2, %v2054_v46, %v2056_v19 }
 0x158   : > { %v1842_v24 = vsel %vm506_vm3, %v1839_v23, %v1841_v10  ;;  %v1837_v44 = vrot.slane %v1760_v0, 1  ;;  %v3531_v26 = vpop.f32.mrf.mxu0 }
 0x159   : > { %v1903_v37 = vadd.f32 %v1842_v24, %v1688_v43  ;;  %v2697_v32 = vpop.f32.mrf.mxu1  ;;  %v2053_v59 = vsel %vm722_vm2, %v2051_v38, %v2052_v58  ;;  %v2055_v45 = vsel %vm722_vm2, %v2052_v58, %v2054_v46 }
 0x15a   : > { %v1838_v40 = vsel %vm506_vm3, %v1836_v51, %v1837_v44  ;;  %v1840_v36 = vsel %vm506_vm3, %v1837_v44, %v1839_v23  ;;  %v1988_v16 = vpop.f32.mrf.mxu0  ;;  %v1847_v5 = vrot.slane %v2697_v32, 1 }
 0x15b   : > { %v2118_v41 = vadd.f32 %v2057_v55, %v1903_v37  ;;  %v1901_v29 = vadd.f32 %v1838_v40, %v1686_v8  ;;  %v1902_v49 = vadd.f32 %v1840_v36, %v1687_v2  ;;  %v1773_v18 = vpop.f32.mrf.mxu1  ;;  %v2058_v61 = vrot.slane %v1988_v16, 2 }
 0x15c   : > { %v1843_v13 = vrot.slane %v1773_v18, 1  ;;  %v3562_v50 = vpop.f32.mrf.mxu0  ;;  %v2062_v2 = vrot.slane %v3531_v26, 2 }
 0x15d   : > { %v2173_v12 = vadd.f32 %v3545_v17, %v2118_v41  ;;  %v2116_v43 = vadd.f32 %v2053_v59, %v1901_v29  ;;  %v2117_v11 = vadd.f32 %v2055_v45, %v1902_v49  ;;  %v2698_v30 = vpop.f32.mrf.mxu1  ;;  %v2064_v4 = vrot.slane %v3562_v50, 2 }
 0x15e   : > { %v1844_v8 = vsel %vm506_vm3, %v1841_v10, %v1843_v13  ;;  %v1849_v15 = vrot.slane %v2698_v30, 1  ;;  %v1991_v35 = vpop.f32.mrf.mxu0  ;;  %v2059_v21 = vsel %vm722_vm2, %v2056_v19, %v2058_v61 }
 0x15f   : > { %v2189_v39 = vmax.f32 %v2173_v12, 0.0  ;;  %v2171_v60 = vadd.f32 %v3545_v17, %v2116_v43  ;;  %v2172_v63 = vadd.f32 %v3545_v17, %v2117_v11  ;;  %v1904_v57 = vadd.f32 %v1844_v8, %v3495_v33  ;;  %v1776_v52 = vpop.f32.mrf.mxu1 }
 0x160   : > { %v1850_v1 = vsel %vm506_vm3, %v1847_v5, %v1849_v15  ;;  %v1845_v62 = vrot.slane %v1776_v52, 1  ;;  %v2060_v23 = vrot.slane %v1991_v35, 2  ;;  %v3573_v31 = vpop.f32.mrf.mxu0  ;;  %v2065_v19 = vsel %vm722_vm2, %v2062_v2, %v2064_v4 }
 0x161   : > { %2205 = vst [vmem:[%s3576_s5 + $0x10] sm:$0xff] %v2189_v39  ;;  %v2187_v10 = vmax.f32 %v2171_v60, 0.0  ;;  %v2188_v20 = vmax.f32 %v2172_v63, 0.0  ;;  %v2119_v46 = vadd.f32 %v2059_v21, %v1904_v57  ;;  %v1907_v33 = vadd.f32 %v1850_v1, %v3498_v3  ;;  %v2701_v0 = vpop.f32.mrf.mxu1 }
 0x162   : > { %v1846_v24 = vsel %vm506_vm3, %v1843_v13, %v1845_v62  ;;  %v1848_v44 = vsel %vm506_vm3, %v1845_v62, %v1847_v5  ;;  %v2061_v58 = vsel %vm722_vm2, %v2058_v61, %v2060_v23  ;;  %v2004_v26 = vpop.f32.mrf.mxu0  ;;  %v2063_v36 = vsel %vm722_vm2, %v2060_v23, %v2062_v2 }
 0x163   : > { %2203 = vst [vmem:[%s3576_s5] sm:$0xff] %v2187_v10  ;;  %2204 = vst [vmem:[%s3576_s5 + $0x8] sm:$0xff] %v2188_v20  ;;  %v2174_v37 = vadd.f32 %v3545_v17, %v2119_v46  ;;  %v2122_v32 = vadd.f32 %v2065_v19, %v1907_v33  ;;  %v1905_v55 = vadd.f32 %v1846_v24, %v3507_v6  ;;  %v1789_v3 = vpop.f32.mrf.mxu1  ;;  %v1855_v16 = vrot.slane %v2701_v0, 1 }
 0x164   : > { %v1906_v40 = vadd.f32 %v1848_v44, %v3501_v14  ;;  %v1851_v41 = vrot.slane %v1789_v3, 1  ;;  %v2066_v29 = vrot.slane %v2004_v26, 2  ;;  %v3590_v49 = vpop.f32.mrf.mxu0  ;;  %v2070_v50 = vrot.slane %v3573_v31, 2 }
 0x165   : > { %v2190_v18 = vmax.f32 %v2174_v37, 0.0  ;;  %v2177_v59 = vadd.f32 %v3545_v17, %v2122_v32  ;;  %v2120_v45 = vadd.f32 %v2061_v58, %v1905_v55  ;;  %v2702_v61 = vpop.f32.mrf.mxu1  ;;  %v2072_v12 = vrot.slane %v3590_v49, 2 }
 0x166   : > { %v2121_v13 = vadd.f32 %v2063_v36, %v1906_v40  ;;  %v1852_v14 = vsel %vm506_vm3, %v1849_v15, %v1851_v41  ;;  %v1857_v6 = vrot.slane %v2702_v61, 1  ;;  %v2007_v43 = vpop.f32.mrf.mxu0  ;;  %v2067_v35 = vsel %vm722_vm2, %v2064_v4, %v2066_v29 }
 0x167   : > { %2206 = vst [vmem:[%s3576_s5 + $0x18] sm:$0xff] %v2190_v18  ;;  %v2193_v11 = vmax.f32 %v2177_v59, 0.0  ;;  %v2175_v2 = vadd.f32 %v3545_v17, %v2120_v45  ;;  %v1908_v5 = vadd.f32 %v1852_v14, %v3510_v28  ;;  %v1792_v8 = vpop.f32.mrf.mxu1  ;;  %v2068_v60 = vrot.slane %v2007_v43, 2 }
 0x168   : > { %v2176_v30 = vadd.f32 %v3545_v17, %v2121_v13  ;;  %v1858_v39 = vsel %vm506_vm3, %v1855_v16, %v1857_v6  ;;  %v1853_v15 = vrot.slane %v1792_v8, 1  ;;  %v3602_v63 = vpop.f32.mrf.mxu0  ;;  %v1699_v28 = vadd.f32 %v3476_v54, %v3538_v22 }
 0x169   : > { %2209 = vst [vmem:[%s3576_s5 + $0x30] sm:$0xff] %v2193_v11  ;;  %v2191_v57 = vmax.f32 %v2175_v2, 0.0  ;;  %v2123_v21 = vadd.f32 %v2067_v35, %v1908_v5  ;;  %v1911_v1 = vadd.f32 %v1858_v39, %v3517_v27  ;;  %v2705_v62 = vpop.f32.mrf.mxu1  ;;  %v2073_v4 = vsel %vm722_vm2, %v2070_v50, %v2072_v12 }
 0x16a   : > { %v2192_v52 = vmax.f32 %v2176_v30, 0.0  ;;  %v1854_v23 = vsel %vm506_vm3, %v1851_v41, %v1853_v15  ;;  %v1856_v31 = vsel %vm506_vm3, %v1853_v15, %v1855_v16  ;;  %v2020_v10 = vpop.f32.mrf.mxu0  ;;  %v2069_v54 = vsel %vm722_vm2, %v2066_v29, %v2068_v60 }
 0x16b   : > { %2207 = vst [vmem:[%s3576_s5 + $0x20] sm:$0xff] %v2191_v57  ;;  %v2178_v20 = vadd.f32 %v3545_v17, %v2123_v21  ;;  %v2126_v46 = vadd.f32 %v2073_v4, %v1911_v1  ;;  %v1909_v33 = vadd.f32 %v1854_v23, %v3523_v25  ;;  %v1910_v27 = vadd.f32 %v1856_v31, %v3513_v47  ;;  %v1805_v0 = vpop.f32.mrf.mxu1 }
 0x16c   : > { %2208 = vst [vmem:[%s3576_s5 + $0x28] sm:$0xff] %v2192_v52  ;;  %v2071_v22 = vsel %vm722_vm2, %v2068_v60, %v2070_v50  ;;  %v1859_v19 = vrot.slane %v1805_v0, 1  ;;  %v2074_v24 = vrot.slane %v2020_v10, 2  ;;  %v2724_v44 = vpop.f32.mrf.mxu0  ;;  %v1863_v40 = vrot.slane %v2705_v62, 1 }
 0x16d   : > { %v2194_v58 = vmax.f32 %v2178_v20, 0.0  ;;  %v2181_v26 = vadd.f32 %v3545_v17, %v2126_v46  ;;  %v2124_v37 = vadd.f32 %v2069_v54, %v1909_v33  ;;  %v2125_v32 = vadd.f32 %v2071_v22, %v1910_v27  ;;  %v2706_v55 = vpop.f32.mrf.mxu1 }
 0x16e   : > { %v1860_v25 = vsel %vm506_vm3, %v1857_v6, %v1859_v19  ;;  %v1865_v47 = vrot.slane %v2706_v55, 1  ;;  %v2080_v3 = vrot.slane %v2724_v44, 2  ;;  %v2023_v18 = vpop.f32.mrf.mxu0  ;;  %v2078_v59 = vrot.slane %v3602_v63, 2 }
 0x16f   : > { %2210 = vst [vmem:[%s3576_s5 + $0x38] sm:$0xff] %v2194_v58  ;;  %v2197_v36 = vmax.f32 %v2181_v26, 0.0  ;;  %v2179_v16 = vadd.f32 %v3545_v17, %v2124_v37  ;;  %v2180_v41 = vadd.f32 %v3545_v17, %v2125_v32  ;;  %v1912_v29 = vadd.f32 %v1860_v25, %v3526_v48  ;;  %v1808_v49 = vpop.f32.mrf.mxu1 }
 0x170   : > { %v2075_v45 = vsel %vm722_vm2, %v2072_v12, %v2074_v24  ;;  %v1866_v13 = vsel %vm506_vm3, %v1863_v40, %v1865_v47  ;;  %v1884_v61 = vsel %vm506_vm3, %v1865_v47, %v1836_v51  ;;  %v2081_v11 = vsel %vm722_vm2, %v2078_v59, %v2080_v3 }
 0x171   : > { %2213 = vst [vmem:[%s3576_s5 + $0x50] sm:$0xff] %v2197_v36  ;;  %v2195_v50 = vmax.f32 %v2179_v16, 0.0  ;;  %v2196_v14 = vmax.f32 %v2180_v41, 0.0  ;;  %v2127_v6 = vadd.f32 %v2075_v45, %v1912_v29  ;;  %v1915_v48 = vadd.f32 %v1866_v13, %v3556_v56 }
 0x172   : > { %v1916_v43 = vadd.f32 %v1884_v61, %v3533_v42  ;;  %v1861_v2 = vrot.slane %v1808_v49, 1  ;;  %v2076_v12 = vrot.slane %v2023_v18, 2  ;;  %v2099_v51 = vsel %vm722_vm2, %v2080_v3, %v2051_v38 }
 0x173   : > { %2211 = vst [vmem:[%s3576_s5 + $0x40] sm:$0xff] %v2195_v50  ;;  %2212 = vst [vmem:[%s3576_s5 + $0x48] sm:$0xff] %v2196_v14  ;;  %v2182_v7 = vadd.f32 %v3545_v17, %v2127_v6  ;;  %v2130_v30 = vadd.f32 %v2081_v11, %v1915_v48  ;;  %v1698_v56 = vadd.f32 %v3458_v53, %v3536_v9 }
 0x174   : > { %v2131_v5 = vadd.f32 %v2099_v51, %v1916_v43  ;;  %v1862_v42 = vsel %vm506_vm3, %v1859_v19, %v1861_v2  ;;  %v1864_v8 = vsel %vm506_vm3, %v1861_v2, %v1863_v40  ;;  %v2077_v60 = vsel %vm722_vm2, %v2074_v24, %v2076_v12 }
 0x175   : > { %v2198_v35 = vmax.f32 %v2182_v7, 0.0  ;;  %v2185_v39 = vadd.f32 %v3545_v17, %v2130_v30  ;;  %v1913_v15 = vadd.f32 %v1862_v42, %v1698_v56  ;;  %v1914_v34 = vadd.f32 %v1864_v8, %v1699_v28 }
 0x176   : > { %v2186_v38 = vadd.f32 %v3545_v17, %v2131_v5  ;;  %v2079_v53 = vsel %vm722_vm2, %v2076_v12, %v2078_v59 }
 0x177   : > { %2214 = vst [vmem:[%s3576_s5 + $0x58] sm:$0xff] %v2198_v35  ;;  %v2201_v9 = vmax.f32 %v2185_v39, 0.0  ;;  %v2128_v63 = vadd.f32 %v2077_v60, %v1913_v15  ;;  %v2129_v57 = vadd.f32 %v2079_v53, %v1914_v34 }
 0x178   : > { %v2202_v52 = vmax.f32 %v2186_v38, 0.0 }
 0x179   : > { %2217 = vst [vmem:[%s3576_s5 + $0x70] sm:$0xff] %v2201_v9  ;;  %v2183_v21 = vadd.f32 %v3545_v17, %v2128_v63  ;;  %v2184_v1 = vadd.f32 %v3545_v17, %v2129_v57 }
 0x17a   : > { %2218 = vst [vmem:[%s3576_s5 + $0x78] sm:$0xff] %v2202_v52 }
 0x17b   : > { %v2199_v62 = vmax.f32 %v2183_v21, 0.0  ;;  %v2200_v28 = vmax.f32 %v2184_v1, 0.0 }
 0x17d   : > { %2215 = vst [vmem:[%s3576_s5 + $0x60] sm:$0xff] %v2199_v62  ;;  %2216 = vst [vmem:[%s3576_s5 + $0x68] sm:$0xff] %v2200_v28 }
 0x17e   : > { %2848 = shalt.err (!%p2845_p6)
}
 0x17f   : > { %s2849_s27 = scalar_lea.hbm %s3659_s11, 2048  ;;  %s2853_s6 = scalar_lea.hbm %s3721_s3, 16384 }
 0x180   : > { %p2850_p7 = scmp.ne.s32.totalorder %s3659_s11, %s2849_s27  ;;  %p2854_p11 = scmp.lt.s32.totalorder %s3659_s11, %s3721_s3 }
 0x181   : > { %p2855_p12 = scmp.lt.s32.totalorder %s2853_s6, %s2849_s27 }
 0x182   : > { %p2851_p9 = pnand %p2850_p7, %p3003_p3 }
 0x183   : > { %p2856_p13 = por %p2855_p12, %p2854_p11 }
 0x184   : > { %p2852_p10 = pneg %p2851_p9 }
 0x186   : > { %p2857_p0 = pnand %p2856_p13, %p2852_p10 }
 0x188   : > { %2860 = shalt.err (!%p2857_p0)
}
 0x189   : > { %s2930_s16 = smov 128   ;;  %s2931_s9 = smov 8  }
 0x18a   : > { %2738 = dma.vmem_to_hbm [thread:$0]  (%p3003_p3), %s3661_s8, 2048, %s3659_s11, %s3667_s20, %s2930_s16, %s2930_s16, %s2931_s9  }
 0x18b PF: > { %p2744_p1 = scmp.ge.s32.totalorder %s2927_s19, 2  ;;  %s2250_s10 = sand.u32 1, %s2899_s12  }
 0x18c   : > { %s2251_s21 = scalar_lea.sflag [#allocation3], %s2250_s10 }
 0x18d   : > { %p2741_p2 = pnand %p2744_p1, %p3012_p8 }
 0x18f   : > { %p2742_p4 = pneg %p2741_p2 }
 0x191   : > { %2894 = dma.done.wait (%p2742_p4), %s2251_s21, 2048  }
 0x192   : > { %2896 = vsyncadd (%p2742_p4), %s2251_s21, 4294965248  ;;  %s16_s19 = sadd.s32 1, %s2927_s19   ;;  %s3732_s12 = smov %s2903_s13 }
 0x193   : > { %p13_p5 = scmp.ge.s32.totalorder %s16_s19, 10   ;;  %s3733_s13 = smov %s2907_s14 }
 0x194   : > { %s3734_s14 = smov %s3021_s30  ;;  %s3735_s15 = smov %s2919_s17 }
 0x195   : > { %s3736_s16 = smov %s2923_s18  ;;  %s3737_s17 = smov %s3740_s22 }
 0x196   : > { %s3738_s18 = smov %s3744_s23  ;;  %15 = sbr.rel (!%p13_p5) target bundleno = 5 (0x5), region = 78 }
 0x19b   :  { %2256 = vsyncpa [#allocation3], 1 }
 0x19c   :  { %2258 = vsyncpa [#allocation3 + $0x1], 1 }

</bundles_post_ra>
